<compile_context>
chip_gen: v7x
topology: tpu7x:2x2x1
jax: 0.10.0
libtpu: 0.0.40
codegen_flags: <defaults>
</compile_context>

<pallas_src>
import functools

import jax
import jax.numpy as jnp
from jax import lax
from jax.experimental import pallas as pl
from jax.experimental.pallas import tpu as pltpu


def _esa_kernel(x_ref, mask_ref, gamma_ref, beta_ref, w_ref, b_ref, hmask_ref,
                o_ref, *, eps, compute_dtype):
    T, D = x_ref.shape

    x = x_ref[...].astype(jnp.float32)          # (T, D)
    mask = mask_ref[...].astype(jnp.float32)    # (T, 1)
    hmask = hmask_ref[...]                      # (D, D) bf16 0/1 block-diag head mask

    # ---- LayerNorm over the last dim (f32, VPU) --------------------------
    mu = jnp.mean(x, axis=-1, keepdims=True)
    xc = x - mu
    var = jnp.mean(xc * xc, axis=-1, keepdims=True)
    xn = xc * lax.rsqrt(var + eps)
    xn = xn * gamma_ref[...] + beta_ref[...]    # gamma/beta are (1, D)

    # ---- fused QKV projection: one (T,D)x(D,3D) MXU matmul ---------------
    # (weight pre-transposed + bf16 host-side; f32 accumulation)
    qkv = jnp.dot(xn.astype(compute_dtype), w_ref[...],
                  preferred_element_type=jnp.float32) + b_ref[...]
    q = qkv[:, :D]           # lane-aligned slices when D % 128 == 0
    k = qkv[:, D:2 * D]
    v = qkv[:, 2 * D:]

    # key masking: key + (1 - src_mask) * -1e6 ; value masking
    k = k + (1.0 - mask) * (-1000000.0)
    v = v * mask

    # ---- key softmax over the sequence axis, denominator folded into att --
    ek = jnp.exp(k - jnp.max(k, axis=0, keepdims=True))        # (T, D), <= 1
    ek_c = ek.astype(compute_dtype)
    v_c = v.astype(compute_dtype)
    # att_raw[d, l] = sum_t ek[t, d] * v[t, l]  (contract over T; MXU)
    att = lax.dot_general(ek_c, v_c, (((0,), (0,)), ((), ())),
                          preferred_element_type=jnp.float32)   # (D, D)
    # S[d] = sum_t ek[t, d], produced directly as a (D, 1) column via a skinny
    # ones-matmul (same contraction pattern as `att`; avoids a (1,D)->(D,1)
    # relayout and any O(T*D) normalization multiply).
    ones_t = jnp.ones((T, 1), dtype=compute_dtype)
    s_k = lax.dot_general(ek_c, ones_t, (((0,), (0,)), ((), ())),
                          preferred_element_type=jnp.float32)   # (D, 1), >= 1
    r_k = pl.reciprocal(jnp.maximum(s_k, 1e-20), approx=True)   # (D, 1)
    # fold key-softmax denominator into att rows and zero cross-head terms
    att = jnp.where(hmask > 0, att * r_k, 0.0)                  # (D, D) f32

    # ---- query softmax per head over Dh; division folded after y ----------
    # (row-global max is a valid shift for every head's softmax of that row)
    eq = jnp.exp(q - jnp.max(q, axis=-1, keepdims=True))        # (T, D)
    eq_c = eq.astype(compute_dtype)
    # per-head denominators broadcast to every lane of the head (block-diag MXU)
    hsum = jnp.dot(eq_c, hmask, preferred_element_type=jnp.float32)   # (T, D)
    # y_unnorm[t, l] = sum_d eq[t, d] * att[d, l]  (cross-head terms are zero)
    y = jnp.dot(eq_c, att.astype(compute_dtype),
                preferred_element_type=jnp.float32)                   # (T, D)
    # normalize after the matmul; clamp guards heads whose exp() underflowed
    # relative to the per-row global max (avoids inf/NaN via approx reciprocal)
    y = y * pl.reciprocal(jnp.maximum(hsum, 1e-20), approx=True)

    # residual (time_embed_dim is None -> y = x + attention)
    o_ref[...] = (x + y).astype(o_ref.dtype)


def efficient_self_attention(x, src_mask, gamma, beta, w_qkv, b_qkv,
                             num_heads, eps=1e-5, compute_dtype=jnp.bfloat16):
    """x: (B, T, D), src_mask: (B, T, 1).

    gamma/beta: (D,) LayerNorm affine params.
    w_qkv: (3D, D), b_qkv: (3D,)  -- torch nn.Linear(D, 3D) params, row order
    [query; key; value].
    """
    B, T, D = x.shape
    assert D % num_heads == 0
    dh = D // num_heads
    # NOTE: D % 128 == 0 keeps the q/k/v lane slices and the output stores
    # lane-aligned; other D still works but pays relayout / masked-store cost.

    # ---- one-time host-side layout prep (outside the kernel) --------------
    w_t = jnp.asarray(w_qkv).T.astype(compute_dtype)               # (D, 3D) bf16
    b = jnp.asarray(b_qkv).reshape(1, 3 * D).astype(jnp.float32)   # (1, 3D)
    g = jnp.asarray(gamma).reshape(1, D).astype(jnp.float32)
    bt = jnp.asarray(beta).reshape(1, D).astype(jnp.float32)
    head_id = jnp.arange(D, dtype=jnp.int32) // dh
    hmask = (head_id[:, None] == head_id[None, :]).astype(compute_dtype)  # (D, D)

    kernel = functools.partial(_esa_kernel, eps=eps, compute_dtype=compute_dtype)

    # per-grid-step VMEM working set -> scoped limit (defaults are 16/32 MiB)
    x_bytes = jnp.dtype(x.dtype).itemsize
    est = (2 * 2 * T * D * x_bytes          # double-buffered x + out blocks
           + 2 * D * 3 * D * 2              # bf16 fused-weight buffers
           + 10 * T * D * 4                 # f32 qkv + softmax temporaries
           + 2 * D * D * 2 + 2 * D * D * 4  # head mask + att
           + 8 * D * 4)                     # small (1,D)/(D,1) vectors
    vmem_limit = int(min(64 * 1024 * 1024, max(32 * 1024 * 1024, 1.25 * est)))

    cost = pl.CostEstimate(
        flops=int(12 * B * T * D * D),                         # qkv(3)+att+hsum+y
        transcendentals=int(3 * B * T * D),                    # exps + reciprocals
        bytes_accessed=int(2 * B * T * D * x_bytes + B * T * 4
                           + D * 3 * D * 2 + D * D * 2 + 8 * D * 4))

    data_map = lambda b_: (b_, 0, 0)
    const_map = lambda b_: (0, 0)

    def build(single_buffer_consts):
        if single_buffer_consts:
            cspec = lambda shp: pl.BlockSpec(shp, const_map,
                                             pipeline_mode=pl.Buffered(buffer_count=1))
        else:
            cspec = lambda shp: pl.BlockSpec(shp, const_map)
        return pl.pallas_call(
            kernel,
            out_shape=jax.ShapeDtypeStruct((B, T, D), x.dtype),
            grid_spec=pltpu.PrefetchScalarGridSpec(
                num_scalar_prefetch=0,
                grid=(B,),
                in_specs=[
                    pl.BlockSpec((pl.Squeezed(), T, D), data_map),   # x
                    pl.BlockSpec((pl.Squeezed(), T, 1), data_map),   # src_mask
                    cspec((1, D)),          # LN gamma
                    cspec((1, D)),          # LN beta
                    cspec((D, 3 * D)),      # fused, pre-transposed W_qkv (bf16)
                    cspec((1, 3 * D)),      # fused bias
                    cspec((D, D)),          # block-diag head mask (bf16)
                ],
                out_specs=pl.BlockSpec((pl.Squeezed(), T, D), data_map),
            ),
            compiler_params=pltpu.CompilerParams(
                dimension_semantics=("parallel",),
                vmem_limit_bytes=vmem_limit),
            cost_estimate=cost,
        )

    args = (x, src_mask, g, bt, w_t, b, hmask)
    try:
        # preferred: single-buffered constant operands (saves a second copy of
        # W_qkv / hmask in VMEM; matters most on v7x's 64 MiB).
        return build(True)(*args)
    except Exception:
        # pipeline_mode=pl.Buffered(1) not supported on this JAX version ->
        # fall back to default (double-buffered) constants; kernel is identical.
        return build(False)(*args)


def _reference(x, src_mask, gamma, beta, w_qkv, b_qkv, num_heads, eps=1e-5):
    """Pure-JAX f32 reference mirroring the PyTorch forward."""
    B, T, D = x.shape
    H = num_heads

    mu = jnp.mean(x, axis=-1, keepdims=True)
    var = jnp.mean((x - mu) ** 2, axis=-1, keepdims=True)
    xn = (x - mu) / jnp.sqrt(var + eps) * gamma.reshape(1, 1, D) + beta.reshape(1, 1, D)

    qkv = xn @ w_qkv.T + b_qkv
    query, key, value = qkv[..., :D], qkv[..., D:2 * D], qkv[..., 2 * D:]
    key = key + (1.0 - src_mask) * (-1000000.0)
    value = value * src_mask

    query = jax.nn.softmax(query.reshape(B, T, H, -1), axis=-1)
    key = jax.nn.softmax(key.reshape(B, T, H, -1), axis=1)
    value = value.reshape(B, T, H, -1)

    attention = jnp.einsum('bnhd,bnhl->bhdl', key, value)
    y = jnp.einsum('bnhd,bhdl->bnhl', query, attention).reshape(B, T, D)
    return x + y


if __name__ == "__main__":
    # D is a multiple of 128 so lane slices / stores are tile-aligned (review).
    B, T, D, H = 2, 16, 128, 4

    keys = jax.random.split(jax.random.PRNGKey(0), 6)
    x = jax.random.normal(keys[0], (B, T, D), dtype=jnp.float32)
    # binary src_mask with a few zeros (padding positions)
    src_mask = (jax.random.uniform(keys[1], (B, T, 1)) > 0.25).astype(jnp.float32)

    # LayerNorm params (perturbed slightly so the affine part is exercised)
    gamma = (1.0 + 0.01 * jax.random.normal(keys[2], (D,))).astype(jnp.float32)
    beta = (0.01 * jax.random.normal(keys[3], (D,))).astype(jnp.float32)

    # fused qkv: nn.Linear(D, 3D) -> weight (3D, D), bias (3D,)
    w_qkv = (0.05 * jax.random.normal(keys[4], (3 * D, D))).astype(jnp.float32)
    b_qkv = (0.05 * jax.random.normal(keys[5], (3 * D,))).astype(jnp.float32)

    out = efficient_self_attention(x, src_mask, gamma, beta, w_qkv, b_qkv,
                                   num_heads=H)
    out = jax.block_until_ready(out)

    ref = _reference(x, src_mask, gamma, beta, w_qkv, b_qkv, num_heads=H)
    assert out.shape == (B, T, D)
    # bf16 MXU inputs (f32 accumulation) + approx-reciprocal softmax -> ~1e-2 err
    max_err = float(jnp.max(jnp.abs(out - ref)))
    assert jnp.allclose(out, ref, rtol=2e-2, atol=2e-2), f"mismatch: {max_err}"

    print("KERNEL_OK")
</pallas_src>

<mosaic_0001>
module attributes {stable_mosaic.version = 11 : i64} {
  func.func @_esa_kernel(%arg0: i32, %arg1: memref<1x16x128xf32, #tpu.memory_space<vmem>>, %arg2: memref<1x16x1xf32, #tpu.memory_space<vmem>>, %arg3: memref<1x128xf32, #tpu.memory_space<vmem>>, %arg4: memref<1x128xf32, #tpu.memory_space<vmem>>, %arg5: memref<128x384xbf16, #tpu.memory_space<vmem>>, %arg6: memref<1x384xf32, #tpu.memory_space<vmem>>, %arg7: memref<128x128xbf16, #tpu.memory_space<vmem>>, %arg8: memref<1x16x128xf32, #tpu.memory_space<vmem>>) attributes {dimension_semantics = [#tpu.dimension_semantics<parallel>], iteration_bounds = array<i64: 2>, scalar_prefetch = 0 : i64, scratch_operands = 0 : i64, tpu.core_type = #tpu.core_type<tc>, window_params = [{transform_indices = @transform_0, window_bounds = array<i64: 1, 16, 128>}, {transform_indices = @transform_1, window_bounds = array<i64: 1, 16, 1>}, {pipeline_mode = #tpu.pipeline_mode<synchronous>, transform_indices = @transform_2, window_bounds = array<i64: 1, 128>}, {pipeline_mode = #tpu.pipeline_mode<synchronous>, transform_indices = @transform_3, window_bounds = array<i64: 1, 128>}, {pipeline_mode = #tpu.pipeline_mode<synchronous>, transform_indices = @transform_4, window_bounds = array<i64: 128, 384>}, {pipeline_mode = #tpu.pipeline_mode<synchronous>, transform_indices = @transform_5, window_bounds = array<i64: 1, 384>}, {pipeline_mode = #tpu.pipeline_mode<synchronous>, transform_indices = @transform_6, window_bounds = array<i64: 128, 128>}, {transform_indices = @transform_7, window_bounds = array<i64: 1, 16, 128>}]} {
    %c0 = arith.constant 0 : index
    %c0_0 = arith.constant 0 : index
    %c0_1 = arith.constant 0 : index
    %0 = vector.load %arg1[%c0, %c0_0, %c0_1] : memref<1x16x128xf32, #tpu.memory_space<vmem>>, vector<1x16x128xf32>
    %1 = vector.shape_cast %0 : vector<1x16x128xf32> to vector<16x128xf32>
    %c0_2 = arith.constant 0 : index
    %c0_3 = arith.constant 0 : index
    %c0_4 = arith.constant 0 : index
    %2 = vector.load %arg2[%c0_2, %c0_3, %c0_4] : memref<1x16x1xf32, #tpu.memory_space<vmem>>, vector<1x16x1xf32>
    %3 = vector.shape_cast %2 : vector<1x16x1xf32> to vector<16x1xf32>
    %c0_5 = arith.constant 0 : index
    %c0_6 = arith.constant 0 : index
    %4 = vector.load %arg7[%c0_5, %c0_6] : memref<128x128xbf16, #tpu.memory_space<vmem>>, vector<128x128xbf16>
    %cst = arith.constant dense<0.000000e+00> : vector<16xf32>
    %5 = vector.multi_reduction <add>, %1, %cst [1] : vector<16x128xf32> to vector<16xf32>
    %6 = vector.shape_cast %5 : vector<16xf32> to vector<16x1xf32>
    %cst_7 = arith.constant 1.280000e+02 : f32
    %7 = vector.broadcast %cst_7 : f32 to vector<16x1xf32>
    %8 = arith.divf %6, %7 : vector<16x1xf32>
    %9 = vector.broadcast %8 : vector<16x1xf32> to vector<16x128xf32>
    %10 = arith.subf %1, %9 : vector<16x128xf32>
    %11 = arith.mulf %10, %10 : vector<16x128xf32>
    %cst_8 = arith.constant dense<0.000000e+00> : vector<16xf32>
    %12 = vector.multi_reduction <add>, %11, %cst_8 [1] : vector<16x128xf32> to vector<16xf32>
    %13 = vector.shape_cast %12 : vector<16xf32> to vector<16x1xf32>
    %cst_9 = arith.constant 1.280000e+02 : f32
    %14 = vector.broadcast %cst_9 : f32 to vector<16x1xf32>
    %15 = arith.divf %13, %14 : vector<16x1xf32>
    %cst_10 = arith.constant 9.99999974E-6 : f32
    %16 = vector.broadcast %cst_10 : f32 to vector<16x1xf32>
    %17 = arith.addf %15, %16 : vector<16x1xf32>
    %18 = math.rsqrt %17 : vector<16x1xf32>
    %19 = vector.broadcast %18 : vector<16x1xf32> to vector<16x128xf32>
    %20 = arith.mulf %10, %19 : vector<16x128xf32>
    %c0_11 = arith.constant 0 : index
    %c0_12 = arith.constant 0 : index
    %21 = vector.load %arg3[%c0_11, %c0_12] : memref<1x128xf32, #tpu.memory_space<vmem>>, vector<1x128xf32>
    %22 = vector.broadcast %21 : vector<1x128xf32> to vector<16x128xf32>
    %23 = arith.mulf %20, %22 : vector<16x128xf32>
    %c0_13 = arith.constant 0 : index
    %c0_14 = arith.constant 0 : index
    %24 = vector.load %arg4[%c0_13, %c0_14] : memref<1x128xf32, #tpu.memory_space<vmem>>, vector<1x128xf32>
    %25 = vector.broadcast %24 : vector<1x128xf32> to vector<16x128xf32>
    %26 = arith.addf %23, %25 : vector<16x128xf32>
    %27 = arith.truncf %26 : vector<16x128xf32> to vector<16x128xbf16>
    %c0_15 = arith.constant 0 : index
    %c0_16 = arith.constant 0 : index
    %28 = vector.load %arg5[%c0_15, %c0_16] : memref<128x384xbf16, #tpu.memory_space<vmem>>, vector<128x384xbf16>
    %cst_17 = arith.constant dense<0.000000e+00> : vector<16x384xf32>
    %29 = tpu.matmul %27, %28, %cst_17 {dimension_numbers = #tpu.dot_dimension_numbers<[1], [0], [0], [1], [0, 0, 1, 1], [], []>} : vector<16x128xbf16>, vector<128x384xbf16>, vector<16x384xf32> -> vector<16x384xf32>
    %c0_18 = arith.constant 0 : index
    %c0_19 = arith.constant 0 : index
    %30 = vector.load %arg6[%c0_18, %c0_19] : memref<1x384xf32, #tpu.memory_space<vmem>>, vector<1x384xf32>
    %31 = vector.broadcast %30 : vector<1x384xf32> to vector<16x384xf32>
    %32 = arith.addf %29, %31 : vector<16x384xf32>
    %33 = vector.extract_strided_slice %32 {offsets = [0, 0], sizes = [16, 128], strides = [1, 1]} : vector<16x384xf32> to vector<16x128xf32>
    %34 = vector.extract_strided_slice %32 {offsets = [0, 128], sizes = [16, 128], strides = [1, 1]} : vector<16x384xf32> to vector<16x128xf32>
    %35 = vector.extract_strided_slice %32 {offsets = [0, 256], sizes = [16, 128], strides = [1, 1]} : vector<16x384xf32> to vector<16x128xf32>
    %cst_20 = arith.constant 1.000000e+00 : f32
    %36 = vector.broadcast %cst_20 : f32 to vector<16x1xf32>
    %37 = arith.subf %36, %3 : vector<16x1xf32>
    %cst_21 = arith.constant -1.000000e+06 : f32
    %38 = vector.broadcast %cst_21 : f32 to vector<16x1xf32>
    %39 = arith.mulf %37, %38 : vector<16x1xf32>
    %40 = vector.broadcast %39 : vector<16x1xf32> to vector<16x128xf32>
    %41 = arith.addf %34, %40 : vector<16x128xf32>
    %42 = vector.broadcast %3 : vector<16x1xf32> to vector<16x128xf32>
    %43 = arith.mulf %35, %42 : vector<16x128xf32>
    %cst_22 = arith.constant dense<0xFF800000> : vector<128xf32>
    %44 = vector.multi_reduction <maximumf>, %41, %cst_22 [0] : vector<16x128xf32> to vector<128xf32>
    %45 = vector.shape_cast %44 : vector<128xf32> to vector<1x128xf32>
    %46 = vector.broadcast %45 : vector<1x128xf32> to vector<16x128xf32>
    %47 = arith.subf %41, %46 : vector<16x128xf32>
    %48 = math.exp %47 : vector<16x128xf32>
    %49 = arith.truncf %48 : vector<16x128xf32> to vector<16x128xbf16>
    %50 = arith.truncf %43 : vector<16x128xf32> to vector<16x128xbf16>
    %cst_23 = arith.constant dense<0.000000e+00> : vector<128x128xf32>
    %51 = tpu.matmul %49, %50, %cst_23 {dimension_numbers = #tpu.dot_dimension_numbers<[0], [0], [1], [1], [0, 1, 1, 1], [], []>} : vector<16x128xbf16>, vector<16x128xbf16>, vector<128x128xf32> -> vector<128x128xf32>
    %cst_24 = arith.constant 1.000000e+00 : bf16
    %52 = vector.broadcast %cst_24 : bf16 to vector<16x1xbf16>
    %cst_25 = arith.constant dense<0.000000e+00> : vector<128x1xf32>
    %53 = tpu.matmul %49, %52, %cst_25 {dimension_numbers = #tpu.dot_dimension_numbers<[0], [0], [1], [1], [0, 1, 1, 1], [], []>} : vector<16x128xbf16>, vector<16x1xbf16>, vector<128x1xf32> -> vector<128x1xf32>
    %cst_26 = arith.constant 9.99999968E-21 : f32
    %54 = vector.broadcast %cst_26 : f32 to vector<128x1xf32>
    %55 = arith.maximumf %53, %54 : vector<128x1xf32>
    %56 = tpu.reciprocal %55 {approx = true} : vector<128x1xf32> -> vector<128x1xf32>
    %cst_27 = arith.constant 0.000000e+00 : bf16
    %57 = vector.broadcast %cst_27 : bf16 to vector<128x128xbf16>
    %58 = arith.cmpf ogt, %4, %57 : vector<128x128xbf16>
    %59 = vector.broadcast %56 : vector<128x1xf32> to vector<128x128xf32>
    %60 = arith.mulf %51, %59 : vector<128x128xf32>
    %cst_28 = arith.constant 0.000000e+00 : f32
    %61 = vector.broadcast %cst_28 : f32 to vector<128x128xf32>
    %62 = arith.select %58, %60, %61 : vector<128x128xi1>, vector<128x128xf32>
    %cst_29 = arith.constant dense<0xFF800000> : vector<16xf32>
    %63 = vector.multi_reduction <maximumf>, %33, %cst_29 [1] : vector<16x128xf32> to vector<16xf32>
    %64 = vector.shape_cast %63 : vector<16xf32> to vector<16x1xf32>
    %65 = vector.broadcast %64 : vector<16x1xf32> to vector<16x128xf32>
    %66 = arith.subf %33, %65 : vector<16x128xf32>
    %67 = math.exp %66 : vector<16x128xf32>
    %68 = arith.truncf %67 : vector<16x128xf32> to vector<16x128xbf16>
    %cst_30 = arith.constant dense<0.000000e+00> : vector<16x128xf32>
    %69 = tpu.matmul %68, %4, %cst_30 {dimension_numbers = #tpu.dot_dimension_numbers<[1], [0], [0], [1], [0, 0, 1, 1], [], []>} : vector<16x128xbf16>, vector<128x128xbf16>, vector<16x128xf32> -> vector<16x128xf32>
    %70 = arith.truncf %62 : vector<128x128xf32> to vector<128x128xbf16>
    %cst_31 = arith.constant dense<0.000000e+00> : vector<16x128xf32>
    %71 = tpu.matmul %68, %70, %cst_31 {dimension_numbers = #tpu.dot_dimension_numbers<[1], [0], [0], [1], [0, 0, 1, 1], [], []>} : vector<16x128xbf16>, vector<128x128xbf16>, vector<16x128xf32> -> vector<16x128xf32>
    %cst_32 = arith.constant 9.99999968E-21 : f32
    %72 = vector.broadcast %cst_32 : f32 to vector<16x128xf32>
    %73 = arith.maximumf %69, %72 : vector<16x128xf32>
    %74 = tpu.reciprocal %73 {approx = true} : vector<16x128xf32> -> vector<16x128xf32>
    %75 = arith.mulf %71, %74 : vector<16x128xf32>
    %76 = arith.addf %1, %75 : vector<16x128xf32>
    %c0_33 = arith.constant 0 : index
    %c0_34 = arith.constant 0 : index
    %c0_35 = arith.constant 0 : index
    %77 = vector.load %arg8[%c0_33, %c0_34, %c0_35] : memref<1x16x128xf32, #tpu.memory_space<vmem>>, vector<1x16x128xf32>
    %78 = vector.shape_cast %77 : vector<1x16x128xf32> to vector<16x128xf32>
    %79 = vector.shape_cast %76 : vector<16x128xf32> to vector<1x16x128xf32>
    tpu.vector_store %arg8[%c0_33, %c0_34, %c0_35], %79 {strides = array<i32>} : memref<1x16x128xf32, #tpu.memory_space<vmem>>, vector<1x16x128xf32>,
    return
  }
  func.func @transform_0(%arg0: i32) -> (i32, i32, i32) {
    %c0_i32 = arith.constant 0 : i32
    %c0_i32_0 = arith.constant 0 : i32
    %c0_i32_1 = arith.constant 0 : i32
    return %arg0, %c0_i32, %c0_i32_0 : i32, i32, i32
  }
  func.func @transform_1(%arg0: i32) -> (i32, i32, i32) {
    %c0_i32 = arith.constant 0 : i32
    %c0_i32_0 = arith.constant 0 : i32
    %c0_i32_1 = arith.constant 0 : i32
    return %arg0, %c0_i32, %c0_i32_0 : i32, i32, i32
  }
  func.func @transform_2(%arg0: i32) -> (i32, i32) {
    %c0_i32 = arith.constant 0 : i32
    %c0_i32_0 = arith.constant 0 : i32
    %c0_i32_1 = arith.constant 0 : i32
    return %c0_i32, %c0_i32_0 : i32, i32
  }
  func.func @transform_3(%arg0: i32) -> (i32, i32) {
    %c0_i32 = arith.constant 0 : i32
    %c0_i32_0 = arith.constant 0 : i32
    %c0_i32_1 = arith.constant 0 : i32
    return %c0_i32, %c0_i32_0 : i32, i32
  }
  func.func @transform_4(%arg0: i32) -> (i32, i32) {
    %c0_i32 = arith.constant 0 : i32
    %c0_i32_0 = arith.constant 0 : i32
    %c0_i32_1 = arith.constant 0 : i32
    return %c0_i32, %c0_i32_0 : i32, i32
  }
  func.func @transform_5(%arg0: i32) -> (i32, i32) {
    %c0_i32 = arith.constant 0 : i32
    %c0_i32_0 = arith.constant 0 : i32
    %c0_i32_1 = arith.constant 0 : i32
    return %c0_i32, %c0_i32_0 : i32, i32
  }
  func.func @transform_6(%arg0: i32) -> (i32, i32) {
    %c0_i32 = arith.constant 0 : i32
    %c0_i32_0 = arith.constant 0 : i32
    %c0_i32_1 = arith.constant 0 : i32
    return %c0_i32, %c0_i32_0 : i32, i32
  }
  func.func @transform_7(%arg0: i32) -> (i32, i32, i32) {
    %c0_i32 = arith.constant 0 : i32
    %c0_i32_0 = arith.constant 0 : i32
    %c0_i32_1 = arith.constant 0 : i32
    return %arg0, %c0_i32, %c0_i32_0 : i32, i32, i32
  }
}

module attributes {stable_mosaic.version = 11 : i64} {
  func.func @_esa_kernel(%arg0: i32, %arg1: memref<1x16x128xf32, #tpu.memory_space<vmem>>, %arg2: memref<1x16x1xf32, #tpu.memory_space<vmem>>, %arg3: memref<1x128xf32, #tpu.memory_space<vmem>>, %arg4: memref<1x128xf32, #tpu.memory_space<vmem>>, %arg5: memref<128x384xbf16, #tpu.memory_space<vmem>>, %arg6: memref<1x384xf32, #tpu.memory_space<vmem>>, %arg7: memref<128x128xbf16, #tpu.memory_space<vmem>>, %arg8: memref<1x16x128xf32, #tpu.memory_space<vmem>>) attributes {dimension_semantics = [#tpu.dimension_semantics<parallel>], iteration_bounds = array<i64: 2>, scalar_prefetch = 0 : i64, scratch_operands = 0 : i64, tpu.core_type = #tpu.core_type<tc>, window_params = [{transform_indices = @transform_0, window_bounds = array<i64: 1, 16, 128>}, {transform_indices = @transform_1, window_bounds = array<i64: 1, 16, 1>}, {pipeline_mode = #tpu.pipeline_mode<synchronous>, transform_indices = @transform_2, window_bounds = array<i64: 1, 128>}, {pipeline_mode = #tpu.pipeline_mode<synchronous>, transform_indices = @transform_3, window_bounds = array<i64: 1, 128>}, {pipeline_mode = #tpu.pipeline_mode<synchronous>, transform_indices = @transform_4, window_bounds = array<i64: 128, 384>}, {pipeline_mode = #tpu.pipeline_mode<synchronous>, transform_indices = @transform_5, window_bounds = array<i64: 1, 384>}, {pipeline_mode = #tpu.pipeline_mode<synchronous>, transform_indices = @transform_6, window_bounds = array<i64: 128, 128>}, {transform_indices = @transform_7, window_bounds = array<i64: 1, 16, 128>}]} {
    %c0 = arith.constant 0 : index
    %c0_0 = arith.constant 0 : index
    %c0_1 = arith.constant 0 : index
    %0 = vector.load %arg1[%c0, %c0_0, %c0_1] : memref<1x16x128xf32, #tpu.memory_space<vmem>>, vector<1x16x128xf32>
    %1 = vector.shape_cast %0 : vector<1x16x128xf32> to vector<16x128xf32>
    %c0_2 = arith.constant 0 : index
    %c0_3 = arith.constant 0 : index
    %c0_4 = arith.constant 0 : index
    %2 = vector.load %arg2[%c0_2, %c0_3, %c0_4] : memref<1x16x1xf32, #tpu.memory_space<vmem>>, vector<1x16x1xf32>
    %3 = vector.shape_cast %2 : vector<1x16x1xf32> to vector<16x1xf32>
    %c0_5 = arith.constant 0 : index
    %c0_6 = arith.constant 0 : index
    %4 = vector.load %arg7[%c0_5, %c0_6] : memref<128x128xbf16, #tpu.memory_space<vmem>>, vector<128x128xbf16>
    %cst = arith.constant dense<0.000000e+00> : vector<16xf32>
    %5 = vector.multi_reduction <add>, %1, %cst [1] : vector<16x128xf32> to vector<16xf32>
    %6 = vector.shape_cast %5 : vector<16xf32> to vector<16x1xf32>
    %cst_7 = arith.constant 1.280000e+02 : f32
    %7 = vector.broadcast %cst_7 : f32 to vector<16x1xf32>
    %8 = arith.divf %6, %7 : vector<16x1xf32>
    %9 = vector.broadcast %8 : vector<16x1xf32> to vector<16x128xf32>
    %10 = arith.subf %1, %9 : vector<16x128xf32>
    %11 = arith.mulf %10, %10 : vector<16x128xf32>
    %cst_8 = arith.constant dense<0.000000e+00> : vector<16xf32>
    %12 = vector.multi_reduction <add>, %11, %cst_8 [1] : vector<16x128xf32> to vector<16xf32>
    %13 = vector.shape_cast %12 : vector<16xf32> to vector<16x1xf32>
    %cst_9 = arith.constant 1.280000e+02 : f32
    %14 = vector.broadcast %cst_9 : f32 to vector<16x1xf32>
    %15 = arith.divf %13, %14 : vector<16x1xf32>
    %cst_10 = arith.constant 9.99999974E-6 : f32
    %16 = vector.broadcast %cst_10 : f32 to vector<16x1xf32>
    %17 = arith.addf %15, %16 : vector<16x1xf32>
    %18 = math.rsqrt %17 : vector<16x1xf32>
    %19 = vector.broadcast %18 : vector<16x1xf32> to vector<16x128xf32>
    %20 = arith.mulf %10, %19 : vector<16x128xf32>
    %c0_11 = arith.constant 0 : index
    %c0_12 = arith.constant 0 : index
    %21 = vector.load %arg3[%c0_11, %c0_12] : memref<1x128xf32, #tpu.memory_space<vmem>>, vector<1x128xf32>
    %22 = vector.broadcast %21 : vector<1x128xf32> to vector<16x128xf32>
    %23 = arith.mulf %20, %22 : vector<16x128xf32>
    %c0_13 = arith.constant 0 : index
    %c0_14 = arith.constant 0 : index
    %24 = vector.load %arg4[%c0_13, %c0_14] : memref<1x128xf32, #tpu.memory_space<vmem>>, vector<1x128xf32>
    %25 = vector.broadcast %24 : vector<1x128xf32> to vector<16x128xf32>
    %26 = arith.addf %23, %25 : vector<16x128xf32>
    %27 = arith.truncf %26 : vector<16x128xf32> to vector<16x128xbf16>
    %c0_15 = arith.constant 0 : index
    %c0_16 = arith.constant 0 : index
    %28 = vector.load %arg5[%c0_15, %c0_16] : memref<128x384xbf16, #tpu.memory_space<vmem>>, vector<128x384xbf16>
    %cst_17 = arith.constant dense<0.000000e+00> : vector<16x384xf32>
    %29 = tpu.matmul %27, %28, %cst_17 {dimension_numbers = #tpu.dot_dimension_numbers<[1], [0], [0], [1], [0, 0, 1, 1], [], []>} : vector<16x128xbf16>, vector<128x384xbf16>, vector<16x384xf32> -> vector<16x384xf32>
    %c0_18 = arith.constant 0 : index
    %c0_19 = arith.constant 0 : index
    %30 = vector.load %arg6[%c0_18, %c0_19] : memref<1x384xf32, #tpu.memory_space<vmem>>, vector<1x384xf32>
    %31 = vector.broadcast %30 : vector<1x384xf32> to vector<16x384xf32>
    %32 = arith.addf %29, %31 : vector<16x384xf32>
    %33 = vector.extract_strided_slice %32 {offsets = [0, 0], sizes = [16, 128], strides = [1, 1]} : vector<16x384xf32> to vector<16x128xf32>
    %34 = vector.extract_strided_slice %32 {offsets = [0, 128], sizes = [16, 128], strides = [1, 1]} : vector<16x384xf32> to vector<16x128xf32>
    %35 = vector.extract_strided_slice %32 {offsets = [0, 256], sizes = [16, 128], strides = [1, 1]} : vector<16x384xf32> to vector<16x128xf32>
    %cst_20 = arith.constant 1.000000e+00 : f32
    %36 = vector.broadcast %cst_20 : f32 to vector<16x1xf32>
    %37 = arith.subf %36, %3 : vector<16x1xf32>
    %cst_21 = arith.constant -1.000000e+06 : f32
    %38 = vector.broadcast %cst_21 : f32 to vector<16x1xf32>
    %39 = arith.mulf %37, %38 : vector<16x1xf32>
    %40 = vector.broadcast %39 : vector<16x1xf32> to vector<16x128xf32>
    %41 = arith.addf %34, %40 : vector<16x128xf32>
    %42 = vector.broadcast %3 : vector<16x1xf32> to vector<16x128xf32>
    %43 = arith.mulf %35, %42 : vector<16x128xf32>
    %cst_22 = arith.constant dense<0xFF800000> : vector<128xf32>
    %44 = vector.multi_reduction <maximumf>, %41, %cst_22 [0] : vector<16x128xf32> to vector<128xf32>
    %45 = vector.shape_cast %44 : vector<128xf32> to vector<1x128xf32>
    %46 = vector.broadcast %45 : vector<1x128xf32> to vector<16x128xf32>
    %47 = arith.subf %41, %46 : vector<16x128xf32>
    %48 = math.exp %47 : vector<16x128xf32>
    %49 = arith.truncf %48 : vector<16x128xf32> to vector<16x128xbf16>
    %50 = arith.truncf %43 : vector<16x128xf32> to vector<16x128xbf16>
    %cst_23 = arith.constant dense<0.000000e+00> : vector<128x128xf32>
    %51 = tpu.matmul %49, %50, %cst_23 {dimension_numbers = #tpu.dot_dimension_numbers<[0], [0], [1], [1], [0, 1, 1, 1], [], []>} : vector<16x128xbf16>, vector<16x128xbf16>, vector<128x128xf32> -> vector<128x128xf32>
    %cst_24 = arith.constant 1.000000e+00 : bf16
    %52 = vector.broadcast %cst_24 : bf16 to vector<16x1xbf16>
    %cst_25 = arith.constant dense<0.000000e+00> : vector<128x1xf32>
    %53 = tpu.matmul %49, %52, %cst_25 {dimension_numbers = #tpu.dot_dimension_numbers<[0], [0], [1], [1], [0, 1, 1, 1], [], []>} : vector<16x128xbf16>, vector<16x1xbf16>, vector<128x1xf32> -> vector<128x1xf32>
    %cst_26 = arith.constant 9.99999968E-21 : f32
    %54 = vector.broadcast %cst_26 : f32 to vector<128x1xf32>
    %55 = arith.maximumf %53, %54 : vector<128x1xf32>
    %56 = tpu.reciprocal %55 {approx = true} : vector<128x1xf32> -> vector<128x1xf32>
    %cst_27 = arith.constant 0.000000e+00 : bf16
    %57 = vector.broadcast %cst_27 : bf16 to vector<128x128xbf16>
    %58 = arith.cmpf ogt, %4, %57 : vector<128x128xbf16>
    %59 = vector.broadcast %56 : vector<128x1xf32> to vector<128x128xf32>
    %60 = arith.mulf %51, %59 : vector<128x128xf32>
    %cst_28 = arith.constant 0.000000e+00 : f32
    %61 = vector.broadcast %cst_28 : f32 to vector<128x128xf32>
    %62 = arith.select %58, %60, %61 : vector<128x128xi1>, vector<128x128xf32>
    %cst_29 = arith.constant dense<0xFF800000> : vector<16xf32>
    %63 = vector.multi_reduction <maximumf>, %33, %cst_29 [1] : vector<16x128xf32> to vector<16xf32>
    %64 = vector.shape_cast %63 : vector<16xf32> to vector<16x1xf32>
    %65 = vector.broadcast %64 : vector<16x1xf32> to vector<16x128xf32>
    %66 = arith.subf %33, %65 : vector<16x128xf32>
    %67 = math.exp %66 : vector<16x128xf32>
    %68 = arith.truncf %67 : vector<16x128xf32> to vector<16x128xbf16>
    %cst_30 = arith.constant dense<0.000000e+00> : vector<16x128xf32>
    %69 = tpu.matmul %68, %4, %cst_30 {dimension_numbers = #tpu.dot_dimension_numbers<[1], [0], [0], [1], [0, 0, 1, 1], [], []>} : vector<16x128xbf16>, vector<128x128xbf16>, vector<16x128xf32> -> vector<16x128xf32>
    %70 = arith.truncf %62 : vector<128x128xf32> to vector<128x128xbf16>
    %cst_31 = arith.constant dense<0.000000e+00> : vector<16x128xf32>
    %71 = tpu.matmul %68, %70, %cst_31 {dimension_numbers = #tpu.dot_dimension_numbers<[1], [0], [0], [1], [0, 0, 1, 1], [], []>} : vector<16x128xbf16>, vector<128x128xbf16>, vector<16x128xf32> -> vector<16x128xf32>
    %cst_32 = arith.constant 9.99999968E-21 : f32
    %72 = vector.broadcast %cst_32 : f32 to vector<16x128xf32>
    %73 = arith.maximumf %69, %72 : vector<16x128xf32>
    %74 = tpu.reciprocal %73 {approx = true} : vector<16x128xf32> -> vector<16x128xf32>
    %75 = arith.mulf %71, %74 : vector<16x128xf32>
    %76 = arith.addf %1, %75 : vector<16x128xf32>
    %c0_33 = arith.constant 0 : index
    %c0_34 = arith.constant 0 : index
    %c0_35 = arith.constant 0 : index
    %77 = vector.load %arg8[%c0_33, %c0_34, %c0_35] : memref<1x16x128xf32, #tpu.memory_space<vmem>>, vector<1x16x128xf32>
    %78 = vector.shape_cast %77 : vector<1x16x128xf32> to vector<16x128xf32>
    %79 = vector.shape_cast %76 : vector<16x128xf32> to vector<1x16x128xf32>
    tpu.vector_store %arg8[%c0_33, %c0_34, %c0_35], %79 {strides = array<i32>} : memref<1x16x128xf32, #tpu.memory_space<vmem>>, vector<1x16x128xf32>,
    return
  }
  func.func @transform_0(%arg0: i32) -> (i32, i32, i32) {
    %c0_i32 = arith.constant 0 : i32
    %c0_i32_0 = arith.constant 0 : i32
    %c0_i32_1 = arith.constant 0 : i32
    return %arg0, %c0_i32, %c0_i32_0 : i32, i32, i32
  }
  func.func @transform_1(%arg0: i32) -> (i32, i32, i32) {
    %c0_i32 = arith.constant 0 : i32
    %c0_i32_0 = arith.constant 0 : i32
    %c0_i32_1 = arith.constant 0 : i32
    return %arg0, %c0_i32, %c0_i32_0 : i32, i32, i32
  }
  func.func @transform_2(%arg0: i32) -> (i32, i32) {
    %c0_i32 = arith.constant 0 : i32
    %c0_i32_0 = arith.constant 0 : i32
    %c0_i32_1 = arith.constant 0 : i32
    return %c0_i32, %c0_i32_0 : i32, i32
  }
  func.func @transform_3(%arg0: i32) -> (i32, i32) {
    %c0_i32 = arith.constant 0 : i32
    %c0_i32_0 = arith.constant 0 : i32
    %c0_i32_1 = arith.constant 0 : i32
    return %c0_i32, %c0_i32_0 : i32, i32
  }
  func.func @transform_4(%arg0: i32) -> (i32, i32) {
    %c0_i32 = arith.constant 0 : i32
    %c0_i32_0 = arith.constant 0 : i32
    %c0_i32_1 = arith.constant 0 : i32
    return %c0_i32, %c0_i32_0 : i32, i32
  }
  func.func @transform_5(%arg0: i32) -> (i32, i32) {
    %c0_i32 = arith.constant 0 : i32
    %c0_i32_0 = arith.constant 0 : i32
    %c0_i32_1 = arith.constant 0 : i32
    return %c0_i32, %c0_i32_0 : i32, i32
  }
  func.func @transform_6(%arg0: i32) -> (i32, i32) {
    %c0_i32 = arith.constant 0 : i32
    %c0_i32_0 = arith.constant 0 : i32
    %c0_i32_1 = arith.constant 0 : i32
    return %c0_i32, %c0_i32_0 : i32, i32
  }
  func.func @transform_7(%arg0: i32) -> (i32, i32, i32) {
    %c0_i32 = arith.constant 0 : i32
    %c0_i32_0 = arith.constant 0 : i32
    %c0_i32_1 = arith.constant 0 : i32
    return %arg0, %c0_i32, %c0_i32_0 : i32, i32, i32
  }
}

</mosaic_0001>

<bundles_post_ra>
// kernel: tpu_custom_call.1
= control target key start
LH: loop header
LB: loop body
LE: loop exit
PB: predicated region body
PF: predicated region fallthrough
CT: control target
= control target key end

     0   :  { %12 = vsyncpa [#allocation3], 0  ;;  %s2477_s0 = inlined_call_operand.vmem [shape: f32[2,16,128], index: 0, kind: input, shape index: {}]   ;;  %s2478_s1 = inlined_call_operand.vmem [shape: f32[2,16,1], index: 1, kind: input, shape index: {}]   ;;  %s2479_s2 = inlined_call_operand.vmem [shape: f32[1,128], index: 2, kind: input, shape index: {}]   ;;  %s2480_s3 = inlined_call_operand.vmem [shape: f32[1,128], index: 3, kind: input, shape index: {}]   ;;  %s2481_s4 = inlined_call_operand.hbm [shape: bf16[128,384], index: 4, kind: input, shape index: {}]   ;;  %s2482_s5 = inlined_call_operand.vmem [shape: f32[1,384], index: 5, kind: input, shape index: {}]   ;;  %s2483_s6 = inlined_call_operand.hbm [shape: bf16[128,128], index: 6, kind: input, shape index: {}]   ;;  %s2484_s7 = inlined_call_operand.hbm [shape: f32[2,16,128], index: 7, kind: output, shape index: {}]  }
   0x1   :  { %13 = vsyncpa [#allocation6], 0 }
   0x2   :  { %14 = vsyncpa [#allocation4], 0 }
   0x3   :  { %16 = vsyncpa [#allocation4 + $0x1], 0  ;;  %s1988_s24 = smov 0   ;;  %s1990_s25 = smov 0  }
   0x4   :  { %s1992_s26 = smov 0   ;;  %s1994_s27 = smov 0  }
   0x5 LB: > { %s2009_s28 = sadd.s32 4294967295, %s1933_s27   ;;  %s1409_s29 = sadd.s32 4294967294, %s1933_s27   ;;  %s1933_s27 = sphi %s1994_s27, %s2532_s27   ;;  %s1929_s26 = sphi %s1992_s26, %s2531_s26   ;;  %s1925_s25 = sphi %s1990_s25, %s2530_s25   ;;  %s1921_s24 = sphi %s1988_s24, %s2529_s24  }
   0x6   : > { %s2013_s30 = sadd.s32 1, %s1933_s27   ;;  %s186_s8 = sadd.s32 1, %s1929_s26 }
   0x7   : > { %s183_s9 = ssub.s32 %s1933_s27, %s2013_s30  ;;  %p196_p0 = scmp.ne.s32.totalorder %s1929_s26, %s1925_s25 }
   0x8   : > { %p184_p1 = scmp.eq.s32.totalorder %s183_s9, 0  ;;  %p197_p2 = scmp.eq.s32.totalorder %s2009_s28, 1 }
   0x9   : > { %p202_p3 = scmp.ne.s32.totalorder %s1925_s25, %s1921_s24  ;;  %p203_p4 = scmp.eq.s32.totalorder %s1409_s29, 1 }
   0xa   : > { %s2024_s10 = scalar_select %p184_p1, %s1929_s26, %s186_s8  }
   0xb   : > { %p2026_p5 = por %p197_p2, %p196_p0  ;;  %p2030_p6 = por %p203_p4, %p202_p3 }
   0xc   : > { %2488 = sst [smem:[#allocation11_spill]] %s2024_s10  ;;  %p1410_p7 = scmp.ge.s32.totalorder %s1933_s27, 1 }
   0xd   : > { %s2489_s11 = scalar_select %p2026_p5, 1, 0 }
   0xe   : > { %s2490_s12 = scalar_select %p2030_p6, 1, 0 }
   0xf   : > { %p210_p8 = scmp.lt.s32.totalorder %s1933_s27, 3  ;;  %p2485_p9 = scmp.eq.s32.totalorder %s2009_s28, 0 }
  0x10   : > { %s1935_s14 = smov [#allocation2]   ;;  %s1936_s17 = smov [#allocation5]  }
  0x11   : > { %p2037_p10 = pnand %p1410_p7, %p210_p8  ;;  %s228_s15 = sshll.u32 %s1935_s14, 4  ;;  %s229_s15 = int_to_ptr.vmem [resolvable:$true] %s228_s15 }
  0x12   : > { %s244_s18 = sshll.u32 %s1936_s17, 4  ;;  %s1807_s21 = scalar_lea.hbm %s2481_s4, 3072  ;;  %s2049_s18 = int_to_ptr.vmem [resolvable:$true] %s244_s18 }
  0x13   : > { %s2491_s13 = scalar_select %p2037_p10, 1, 0 }
  0x14   : > { %p1655_p11 = pneg %p2037_p10  ;;  %p1808_p13 = scmp.ne.s32.totalorder %s2481_s4, %s1807_s21 }
  0x15   : > { %p1814_p3 = scmp.lt.u32.totalorder %s1807_s21, %s2481_s4 }
  0x16   : > { %p2045_p12 = pnand %p2485_p9, %p1655_p11 }
  0x18   : > { %p1809_p0 = pneg %p2045_p12 }
  0x1a   : > { %p1810_p1 = pnand %p1809_p0, %p1808_p13 }
  0x1c   : > { %p1811_p2 = pneg %p1810_p1 }
  0x1e   : > { %p1816_p4 = pnand %p1814_p3, %p1811_p2 }
  0x20   : > { %1819 = shalt.err (!%p1816_p4)
}
  0x21   : > { %s1820_s9 = scalar_lea.vmem %s229_s15, 3072  ;;  %p1828_p9 = scmp.lt.s32.totalorder %s229_s15, %s229_s15 }
  0x22   : > { %p1821_p7 = scmp.ne.s32.totalorder %s229_s15, %s1820_s9  ;;  %p1829_p6 = scmp.lt.s32.totalorder %s1820_s9, %s1820_s9 }
  0x24   : > { %p1823_p8 = pnand %p1821_p7, %p1809_p0  ;;  %p1830_p5 = por %p1829_p6, %p1828_p9 }
  0x26   : > { %p1824_p11 = pneg %p1823_p8 }
  0x28   : > { %p1831_p10 = pnand %p1830_p5, %p1824_p11 }
  0x2a   : > { %1834 = shalt.err (!%p1831_p10)
}
  0x2b   : > { %s1937_s14 = smov 192   ;;  %s1938_s17 = smov 12  }
  0x2c   : > { %1658 = dma.hbm_to_vmem [thread:$0]  (!%p2045_p12), %s2481_s4, 3072, %s229_s15, [#allocation3], %s1937_s14, %s1937_s14, %s1938_s17  }
  0x2d   : > { %s1835_s23 = scalar_lea.hbm %s2483_s6, 1024 }
  0x2e   : > { %p1836_p13 = scmp.ne.s32.totalorder %s2483_s6, %s1835_s23  ;;  %p1842_p9 = scmp.lt.u32.totalorder %s1835_s23, %s2483_s6 }
  0x30   : > { %p1838_p5 = pnand %p1836_p13, %p1809_p0 }
  0x32   : > { %p1839_p6 = pneg %p1838_p5 }
  0x34   : > { %p1844_p10 = pnand %p1842_p9, %p1839_p6 }
  0x36   : > { %1847 = shalt.err (!%p1844_p10)
}
  0x37   : > { %s1848_s15 = scalar_lea.vmem %s2049_s18, 1024  ;;  %p1856_p4 = scmp.lt.s32.totalorder %s2049_s18, %s2049_s18 }
  0x38   : > { %p1849_p1 = scmp.ne.s32.totalorder %s2049_s18, %s1848_s15  ;;  %p1857_p7 = scmp.lt.s32.totalorder %s1848_s15, %s1848_s15 }
  0x3a   : > { %p1851_p2 = pnand %p1849_p1, %p1809_p0  ;;  %p1858_p8 = por %p1857_p7, %p1856_p4 }
  0x3c   : > { %p1852_p3 = pneg %p1851_p2 }
  0x3e   : > { %p1859_p11 = pnand %p1858_p8, %p1852_p3 }
  0x40   : > { %1862 = shalt.err (!%p1859_p11)
}
  0x41   : > { %s1939_s10 = smov 64   ;;  %s1940_s14 = smov 4  }
  0x42   : > { %1661 = dma.hbm_to_vmem [thread:$0]  (!%p2045_p12), %s2483_s6, 1024, %s2049_s18, [#allocation6], %s1939_s10, %s1939_s10, %s1940_s14  }
  0x43   : > { %p2493_p13 = scmp.ne.s32.totalorder %s2491_s13, 0 }
  0x44   : > { %p2494_p0 = scmp.eq.s32.totalorder (!%p2493_p13), %s2009_s28, 0 }
  0x45   : > { %276 = sbr.rel (%p2493_p13) target bundleno = 1388 (0x56c), region = 48 }
  0x4c   : > { %1908 = dma.done.wait (%p2494_p0), [#allocation3], 3072   ;;  %p2495_p5 = pmov %p2494_p0 }
  0x4d   : > { %p2496_p6 = pmov %p2494_p0 }
  0x4e   : > { %1910 = vsyncadd (%p2495_p5), [#allocation3], 4294964224 }
  0x4f   : > { %1912 = dma.done.wait (%p2496_p6), [#allocation6], 1024   ;;  %p2497_p9 = pmov %p2494_p0 }
  0x50   : > { %p317_p10 = scmp.lt.s32.totalorder %s2009_s28, 1  ;;  %v1717_v2 = vld [vmem:[#allocation2 + $0x4] ss:$12 sps:$4 sm:$0xff]   ;;  %v1719_v3 = vld [vmem:[#allocation2] ss:$12 sps:$4 sm:$0xff]   ;;  %v1941_v4 = vmov 0.0   ;;  %v427_v60 = vlaneseq }
  0x51   : > { %1914 = vsyncadd (%p2497_p9), [#allocation6], 4294966272  ;;  %1549 = vmatprep.subr.bf16.mxu1 %v1941_v4  ;;  %v1720_v5 = vld [vmem:[#allocation2 + $0x8] ss:$12 sps:$4 sm:$0xff]   ;;  %570 = vmatprep.subr.bf16.mxu0 %v1717_v2  ;;  %v1723_v15 = vld [vmem:[#allocation2 + $0x18] ss:$12 sps:$4 sm:$0xff]  }
  0x52   : > { %s2110_s16 = scalar_select %p317_p10, %s2009_s28, 1  ;;  %v1721_v6 = vld [vmem:[#allocation2 + $0x1c] ss:$12 sps:$4 sm:$0xff]   ;;  %571 = vmatpush1.bf16.msra.mxu0 %v1719_v3  ;;  %1550 = vmatpush3.bf16.msra.mxu1 %v1720_v5  ;;  %v1724_v16 = vld [vmem:[#allocation2 + $0x20] ss:$12 sps:$4 sm:$0xff]   ;;  %v1942_v30 = vmov 0  }
  0x53   : > { %572 = vmatprep.subr.bf16.mxu0 %v1721_v6  ;;  %1551 = vmatprep.subr.bf16.mxu1 %v1941_v4  ;;  %v1725_v17 = vld [vmem:[#allocation2 + $0x34] ss:$12 sps:$4 sm:$0xff]   ;;  %v1727_v18 = vld [vmem:[#allocation2 + $0x30] ss:$12 sps:$4 sm:$0xff]   ;;  %v1728_v19 = vld [vmem:[#allocation2 + $0x38] ss:$12 sps:$4 sm:$0xff]  }
  0x54   : > { %s1501_s13 = sshll.u32 %s2110_s16, 4  ;;  %v1729_v20 = vld [vmem:[#allocation2 + $0x4c] ss:$12 sps:$4 sm:$0xff]   ;;  %v1731_v21 = vld [vmem:[#allocation2 + $0x48] ss:$12 sps:$4 sm:$0xff]   ;;  %602 = vmatprep.mubr.bf16.mxu0 %v1942_v30  ;;  %vm1943_vm0 = vmmov 0   ;;  %1715 = vset.pattern.permute.xlu0 %v1942_v30 }
  0x55   : > { %s2118_s21 = scalar_lea.vmem %s2477_s0, %s1501_s13  ;;  %v1732_v22 = vld [vmem:[#allocation2 + $0x50] ss:$12 sps:$4 sm:$0xff]   ;;  %v1735_v24 = vld [vmem:[#allocation2 + $0x60] ss:$12 sps:$4 sm:$0xff]   ;;  %v1736_v25 = vld [vmem:[#allocation2 + $0x68] ss:$12 sps:$4 sm:$0xff]   ;;  %1565 = vmatprep.mubr.msk.bf16.mxu1 %vm1943_vm0, %v1941_v4  ;;  %1716 = vset.pattern.permute.xlu1 %v1942_v30  ;;  %s326_s29 = scalar_lea.vmem %s2478_s1, %s1501_s13 }
  0x56   : > { %v331_v0 = vld [vmem:[%s2118_s21] sm:$0xff]  ;;  %v332_v1 = vld [vmem:[%s2118_s21 + $0x8] sm:$0xff]  ;;  %573 = vmatpush1.bf16.msra.mxu0 %v1723_v15  ;;  %1552 = vmatpush3.bf16.msra.mxu1 %v1724_v16  ;;  %v1743_v31 = vld [vmem:[#allocation2 + $0x90] ss:$12 sps:$4 sm:$0xff]   ;;  %v1944_v59 = vmov 1065369472  }
  0x57   : > { %351 = vadd.xlane.f32.xlu0 %v331_v0  ;;  %1553 = vmatprep.subr.bf16.mxu1 %v1941_v4  ;;  %v1733_v23 = vld [vmem:[#allocation2 + $0x64] ss:$12 sps:$4 sm:$0xff]   ;;  %v1737_v26 = vld [vmem:[#allocation2 + $0x7c] ss:$12 sps:$4 sm:$0xff]   ;;  %v1740_v28 = vld [vmem:[#allocation2 + $0x80] ss:$12 sps:$4 sm:$0xff]  }
  0x58   : > { %574 = vmatprep.subr.bf16.mxu0 %v1725_v17  ;;  %v1739_v27 = vld [vmem:[#allocation2 + $0x78] ss:$12 sps:$4 sm:$0xff]   ;;  %v1741_v29 = vld [vmem:[#allocation2 + $0x94] ss:$12 sps:$4 sm:$0xff]   ;;  %v1748_v35 = vld [vmem:[#allocation2 + $0xb0] ss:$12 sps:$4 sm:$0xff]  }
  0x59   : > { %v1744_v32 = vld [vmem:[#allocation2 + $0x98] ss:$12 sps:$4 sm:$0xff]   ;;  %v1747_v34 = vld [vmem:[#allocation2 + $0xa8] ss:$12 sps:$4 sm:$0xff]   ;;  %v1422_v50 = vld [vmem:[%s2479_s2] ss:$0 sm:$0xff] }
  0x5a   : > { %575 = vmatpush1.bf16.msra.mxu0 %v1727_v18  ;;  %1554 = vmatpush3.bf16.msra.mxu1 %v1728_v19  ;;  %v1745_v33 = vld [vmem:[#allocation2 + $0xac] ss:$12 sps:$4 sm:$0xff]   ;;  %v333_v36 = vld [vmem:[%s326_s29] sm:$0xff]  ;;  %v428_v62 = vshrl.u32 %v427_v60, 7  ;;  %vm713_vm1 = vcmask 130048   ;;  %s314_s19 = sand.u32 1, %s1925_s25  }
  0x5b   : > { %353 = vadd.xlane.f32.xlu0 %v332_v1  ;;  %1555 = vmatprep.subr.bf16.mxu1 %v1941_v4  ;;  %v334_v37 = vld [vmem:[%s326_s29 + $0x8] sm:$0xff]  ;;  %v654_v38 = vsub.f32 1.0, %v333_v36  ;;  %v1423_v54 = vld [vmem:[%s2480_s3] ss:$0 sm:$0xff]  ;;  %s1417_s16 = sshll.u32 %s314_s19, 4  ;;  %s1503_s20 = sshll.u32 %s2009_s28, 8 }
  0x5c   : > { %576 = vmatprep.subr.bf16.mxu0 %v1729_v20  ;;  %v655_v39 = vsub.f32 1.0, %v334_v37  ;;  %v429_v63 = vsub.s32 0, %v428_v62  ;;  %v425_v2 = vld [vmem:[%s2482_s5] sm:$0x7]  ;;  %v433_v3 = vsub.s32 1, %v428_v62  ;;  %s316_s13 = scalar_lea.vmem [#allocation7], %s1417_s16  ;;  %s2433_s29 = scalar_lea.hbm %s2484_s7, %s1503_s20 }
  0x5d   : > { %v656_v40 = vmul.f32 -1000000.0, %v654_v38  ;;  %v2202_v60 = vld [vmem:[#allocation5 + $0x20] sm:$0xf]  ;;  %s1313_s18 = sshll.u32 %s316_s13, 4  ;;  %s2436_s28 = scalar_lea.sflag [#allocation4], %s314_s19  ;;  %s2428_s18 = int_to_ptr.vmem [resolvable:$true] %s1313_s18 }
  0x5e   : > { %577 = vmatpush1.bf16.msra.mxu0 %v1731_v21  ;;  %1556 = vmatpush3.bf16.msra.mxu1 %v1732_v22  ;;  %v657_v41 = vmul.f32 -1000000.0, %v655_v39  ;;  %v430_v5 = vrot.slane %v425_v2, %v429_v63  ;;  %vm972_vm15 = vcmp.gt.bf16.partialorder %v2202_v60, 0  ;;  %s1863_s8 = scalar_lea.vmem %s2428_s18, 256  ;;  %p2526_p1 = scmp.ne.s32.totalorder %s2489_s11, 0 }
  0x5f   : > { %1557 = vmatprep.subr.bf16.mxu1 %v1941_v4  ;;  %578 = vmatprep.subr.bf16.mxu0 %v1733_v23  ;;  %p1864_p12 = scmp.ne.s32.totalorder %s2428_s18, %s1863_s8  ;;  %s1945_s9 = smov [#allocation7]  }
  0x60   : > { %s1867_s15 = sshll.u32 %s1945_s9, 4  ;;  %s1868_s15 = int_to_ptr.vmem [resolvable:$false] %s1867_s15 }
  0x61   : > { %p1865_p2 = pnand %p1864_p12, %p2526_p1  ;;  %s1869_s10 = scalar_lea.vmem %s1868_s15, 512 }
  0x62   : > { %579 = vmatpush1.bf16.msra.mxu0 %v1735_v24  ;;  %1558 = vmatpush3.bf16.msra.mxu1 %v1736_v25  ;;  %p1870_p4 = scmp.lt.s32.totalorder %s2428_s18, %s1868_s15  ;;  %p1871_p7 = scmp.lt.s32.totalorder %s1869_s10, %s1863_s8 }
  0x63   : > { %580 = vmatprep.subr.bf16.mxu0 %v1737_v26  ;;  %1559 = vmatprep.subr.bf16.mxu1 %v1941_v4  ;;  %p1866_p3 = pneg %p1865_p2 }
  0x64   : > { %p1872_p8 = por %p1871_p7, %p1870_p4 }
  0x66   : > { %581 = vmatpush1.bf16.msra.mxu0 %v1739_v27  ;;  %1560 = vmatpush3.bf16.msra.mxu1 %v1740_v28  ;;  %p1873_p11 = pnand %p1872_p8, %p1866_p3 }
  0x67   : > { %582 = vmatprep.subr.bf16.mxu0 %v1741_v29  ;;  %1561 = vmatprep.subr.bf16.mxu1 %v1941_v4 }
  0x6a   : > { %583 = vmatpush1.bf16.msra.mxu0 %v1743_v31  ;;  %1562 = vmatpush3.bf16.msra.mxu1 %v1744_v32 }
  0x6b   : > { %584 = vmatprep.subr.bf16.mxu0 %v1745_v33  ;;  %1563 = vmatprep.subr.bf16.mxu1 %v1941_v4 }
  0x6e   : > { %585 = vmatpush1.bf16.msra.mxu0 %v1747_v34  ;;  %1564 = vmatpush3.bf16.msra.mxu1 %v1748_v35 }
  0x6f   : > { %1587 = vmatprep.subr.bf16.mxu1 %v1944_v59 }
  0x71   : > { %660 = vperm.xlu0 %1715, %v656_v40  }
  0x75   : > { %672 = vperm.xlu0 %1715, %v333_v36  }
  0x79   : > { %677 = vperm.xlu0 %1715, %v334_v37  }
  0xe4   : > { %v352_v7 = vpop.xlane.xlu0 %351 }
  0xe5   : > { %v356_v8 = vmul.f32 0.0078125, %v352_v7  ;;  %v434_v7 = vrot.slane %v425_v2, %v433_v3 }
  0xe7   : > { %v2124_v9 = vsub.f32 %v331_v0, %v356_v8  ;;  %v437_v0 = vsub.s32 2, %v428_v62 }
  0xe8   : > { %v354_v10 = vpop.xlane.xlu0 %353 }
  0xe9   : > { %v357_v11 = vmul.f32 0.0078125, %v354_v10  ;;  %v360_v12 = vmul.f32 %v2124_v9, %v2124_v9  ;;  %v438_v6 = vrot.slane %v425_v2, %v437_v0  ;;  %v2211_v0 = vld [vmem:[#allocation5 + $0x28] sm:$0xf] }
  0xeb   : > { %v2128_v13 = vsub.f32 %v332_v1, %v357_v11  ;;  %362 = vadd.xlane.f32.xlu1 %v360_v12 }
  0xed   : > { %v361_v14 = vmul.f32 %v2128_v13, %v2128_v13 }
  0xef   : > { %364 = vadd.xlane.f32.xlu1 %v361_v14 }
  0xf0   : > { %v661_v61 = vpop.permute.xlu0 %660 }
  0xf4   : > { %v673_v1 = vpop.permute.xlu0 %672 }
  0xf8   : > { %v678_v8 = vpop.permute.xlu0 %677 }
 0x100   : > { %665 = vperm.xlu1 %1716, %v657_v41  }
 0x178   : > { %v363_v42 = vpop.xlane.xlu1 %362 }
 0x179   : > { %v366_v43 = vmul.f32 0.0078125, %v363_v42 }
 0x17b   : > { %v368_v44 = vadd.f32 1e-05, %v366_v43 }
 0x17c   : > { %v365_v45 = vpop.xlane.xlu1 %364 }
 0x17d   : > { %1757 = vrsqrt.f32 %v368_v44  ;;  %v367_v46 = vmul.f32 0.0078125, %v365_v45  ;;  %v2167_v44 = vld [vmem:[#allocation5] sm:$0xf]  ;;  %v2169_v45 = vld [vmem:[#allocation5 + $0x4] sm:$0xf] }
 0x17e   : > { %vm964_vm2 = vcmp.gt.bf16.partialorder %v2167_v44, 0  ;;  %vm965_vm3 = vcmp.gt.bf16.partialorder %v2169_v45, 0 }
 0x17f   : > { %v369_v47 = vadd.f32 1e-05, %v367_v46 }
 0x181   : > { %1759 = vrsqrt.f32 %v369_v47  ;;  %v1464_v47 = vcombine.low %v2167_v44, %v2169_v45 }
 0x187   : > { %v1758_v48 = vpop.eup %1757 }
 0x188   : > { %v372_v49 = vmul.f32 %v1758_v48, %v2124_v9  ;;  %v666_v9 = vpop.permute.xlu1 %665  ;;  %v2175_v48 = vld [vmem:[#allocation5 + $0x8] sm:$0xf] }
 0x189   : > { %vm966_vm4 = vcmp.gt.bf16.partialorder %v2175_v48, 0 }
 0x18a   : > { %v381_v53 = vmul.f32 %v1422_v50, %v372_v49  ;;  %v2177_v49 = vld [vmem:[#allocation5 + $0xc] sm:$0xf] }
 0x18b   : > { %v1760_v51 = vpop.eup %1759  ;;  %vm967_vm5 = vcmp.gt.bf16.partialorder %v2177_v49, 0 }
 0x18c   : > { %v373_v52 = vmul.f32 %v1760_v51, %v2128_v13  ;;  %v390_v56 = vadd.f32 %v1423_v54, %v381_v53  ;;  %v1465_v51 = vcombine.low %v2175_v48, %v2177_v49  ;;  %v2186_v53 = vld [vmem:[#allocation5 + $0x14] sm:$0xf] }
 0x18d   : > { %vm969_vm7 = vcmp.gt.bf16.partialorder %v2186_v53, 0 }
 0x18e   : > { %v382_v55 = vmul.f32 %v1422_v50, %v373_v52  ;;  %v2184_v52 = vld [vmem:[#allocation5 + $0x10] sm:$0xf] }
 0x18f   : > { %vm968_vm6 = vcmp.gt.bf16.partialorder %v2184_v52, 0 }
 0x190   : > { %v391_v57 = vadd.f32 %v1423_v54, %v382_v55  ;;  %v1466_v55 = vcombine.low %v2184_v52, %v2186_v53  ;;  %v1081_v52 = vsel %vm969_vm7, 65537, %v1942_v30 }
 0x192   : > { %v392_v58 = vpack.c.bf16 %v391_v57, %v390_v56  ;;  %v2193_v56 = vld [vmem:[#allocation5 + $0x18] sm:$0xf]  ;;  %v2195_v57 = vld [vmem:[#allocation5 + $0x1c] sm:$0xf] }
 0x193   : > { %vm970_vm11 = vcmp.gt.bf16.partialorder %v2193_v56, 0  ;;  %vm971_vm12 = vcmp.gt.bf16.partialorder %v2195_v57, 0 }
 0x194   : > { %603 = vmatmul.mubr.bf16.vlgmr.msra.gmra.mrb[0].mxu0 %v392_v58  ;;  %1566 = vmatmul.mubr.bf16.vlgmr.msra.gmra.mrb[0].mxu1 %v392_v58 }
 0x195   : > { %1588 = vmatpush3.bf16.msra.mxu1 %v1944_v59  ;;  %v1467_v59 = vcombine.low %v2193_v56, %v2195_v57  ;;  %v1083_v56 = vsel %vm971_vm12, 65537, %v1942_v30 }
 0x196   : > { %1625 = vmatprep.subr.bf16.mxu1 %v1941_v4 }
 0x267   : > { %v604_v10 = vpop.f32.mrb[0].mxu0  ;;  %v647_v11 = vpop.f32.mrb[0].mxu1 }
 0x268   : > { %v2160_v12 = vadd.f32 %v604_v10, %v430_v5  ;;  %v648_v13 = vadd.f32 %v647_v11, %v438_v6  ;;  %v606_v14 = vpop.f32.mrb[1].mxu0  ;;  %v1567_v15 = vpop.f32.mrb[1].mxu1  ;;  %v2231_v10 = vld [vmem:[#allocation5 + $0x3c] sm:$0xf] }
 0x269   : > { %v607_v16 = vadd.f32 %v606_v14, %v434_v7  ;;  %v608_v17 = vpop.f32.mrb[2].mxu0  ;;  %v650_v18 = vpop.f32.mrb[2].mxu1 }
 0x26a   : > { %v2162_v19 = vadd.f32 %v608_v17, %v430_v5  ;;  %v651_v20 = vadd.f32 %v650_v18, %v438_v6  ;;  %v610_v21 = vpop.f32.mrb[3].mxu0  ;;  %v1568_v22 = vpop.f32.mrb[3].mxu1  ;;  %1140 = vmax.xlane.f32.xlu0 %v2160_v12  ;;  %v680_v24 = vmul.f32 %v673_v1, %v648_v13  ;;  %v2213_v1 = vld [vmem:[#allocation5 + $0x2c] sm:$0xf]  ;;  %v2220_v5 = vld [vmem:[#allocation5 + $0x30] sm:$0xf] }
 0x26b   : > { %v611_v23 = vadd.f32 %v610_v21, %v434_v7  ;;  %v668_v26 = vadd.f32 %v661_v61, %v607_v16  ;;  %v2204_v61 = vld [vmem:[#allocation5 + $0x24] sm:$0xf]  ;;  %v1469_v3 = vcombine.low %v2211_v0, %v2213_v1  ;;  %v2222_v6 = vld [vmem:[#allocation5 + $0x34] sm:$0xf] }
 0x26c   : > { %v681_v25 = vmul.f32 %v678_v8, %v651_v20  ;;  %v1468_v63 = vcombine.low %v2202_v60, %v2204_v61  ;;  %v1470_v8 = vcombine.low %v2220_v5, %v2222_v6 }
 0x26d   : > { %v669_v27 = vadd.f32 %v666_v9, %v611_v23  ;;  %v2229_v9 = vld [vmem:[#allocation5 + $0x38] sm:$0xf] }
 0x26e   : > { %v696_v28 = vpack.c.bf16 %v681_v25, %v680_v24  ;;  %v1471_v13 = vcombine.low %v2229_v9, %v2231_v10 }
 0x26f   : > { %v682_v29 = vmax.f32 %v668_v26, %v669_v27 }
 0x270   : > { %1569 = vmatprep.subr.bf16.mxu0 %v696_v28 }
 0x271   : > { %v683_v31 = vrot.slane %v682_v29, 4  ;;  %1570 = vmatpush3.bf16.msra.mxu0 %v696_v28 }
 0x272   : > { %1605 = vmatprep.subr.bf16.mxu0 %v1941_v4 }
 0x273   : > { %v684_v32 = vmax.f32 %v682_v29, %v683_v31 }
 0x275   : > { %v685_v33 = vrot.slane %v684_v32, 2 }
 0x277   : > { %v686_v34 = vmax.f32 %v684_v32, %v685_v33 }
 0x279   : > { %v687_v35 = vrot.slane %v686_v34, 1 }
 0x27b   : > { %v688_v36 = vmax.f32 %v686_v34, %v687_v35 }
 0x27d   : > { %v689_v37 = vsub.f32 %v668_v26, %v688_v36  ;;  %v690_v38 = vsub.f32 %v669_v27, %v688_v36 }
 0x27f   : > { %v691_v39 = vmul.f32 1.442695, %v689_v37  ;;  %v693_v40 = vmul.f32 1.442695, %v690_v38 }
 0x281   : > { %1761 = vpow2.f32 %v691_v39 }
 0x282   : > { %1763 = vpow2.f32 %v693_v40 }
 0x28b   : > { %v1762_v41 = vpop.eup %1761 }
 0x28c   : > { %v1764_v42 = vpop.eup %1763 }
 0x28d   : > { %v695_v43 = vpack.c.bf16 %v1764_v42, %v1762_v41 }
 0x28f   : > { %697 = vxpose.xlu1.c.b16.start.end [1/1] (short) %v695_v43, 128 }
 0x2b8   : > { %1142 = vmax.xlane.f32.xlu1 %v2162_v19 }
 0x2f5   : > { %v705_v46 = vpop.trf.xlu1 }
 0x2f6   : > { %1571 = vmatprep.mubr.msk.bf16.mxu0 %vm713_vm1, %v705_v46  ;;  %1589 = vmatprep.mubr.msk.bf16.mxu1 %vm713_vm1, %v705_v46 }
 0x2f7   : > { %v1141_v14 = vpop.xlane.xlu0 %1140 }
 0x2f8   : > { %v1144_v15 = vsub.f32 %v2160_v12, %v1141_v14 }
 0x2f9   : > { %v706_v50 = vpop.trf.xlu1 }
 0x2fa   : > { %1572 = vmatmul.mubr.msk.bf16.vlgmr.msra.gmra.mrb[4].mxu0 %vm713_vm1, %v706_v50  ;;  %1590 = vmatmul.mubr.msk.bf16.vlgmr.msra.gmra.mrb[4].mxu1 %vm713_vm1, %v706_v50  ;;  %v1146_v16 = vmul.f32 1.442695, %v1144_v15 }
 0x2fb   : > { %1606 = vmatpush3.bf16.msra.mxu0 %v1464_v47 }
 0x2fc   : > { %1607 = vmatprep.subr.bf16.mxu0 %v1941_v4  ;;  %1765 = vpow2.f32 %v1146_v16 }
 0x2fd   : > { %v707_v54 = vpop.trf.xlu1 }
 0x2fe   : > { %1575 = vmatprep.mubr.msk.bf16.mxu0 %vm713_vm1, %v707_v54  ;;  %1593 = vmatprep.mubr.msk.bf16.mxu1 %vm713_vm1, %v707_v54 }
 0x2ff   : > { %1608 = vmatpush3.bf16.msra.mxu0 %v1465_v51 }
 0x300   : > { %1609 = vmatprep.subr.bf16.mxu0 %v1941_v4 }
 0x301   : > { %v708_v58 = vpop.trf.xlu1 }
 0x302   : > { %1576 = vmatmul.mubr.msk.bf16.gmra.mrb[8].mxu0 %vm713_vm1, %v708_v58  ;;  %1594 = vmatmul.mubr.msk.bf16.gmra.mrb[8].mxu1 %vm713_vm1, %v708_v58 }
 0x303   : > { %1610 = vmatpush3.bf16.msra.mxu0 %v1466_v55 }
 0x304   : > { %1611 = vmatprep.subr.bf16.mxu0 %v1941_v4 }
 0x305   : > { %v709_v62 = vpop.trf.xlu1 }
 0x306   : > { %1579 = vmatprep.mubr.msk.bf16.mxu0 %vm713_vm1, %v709_v62  ;;  %1597 = vmatprep.mubr.msk.bf16.mxu1 %vm713_vm1, %v709_v62  ;;  %v1766_v21 = vpop.eup %1765 }
 0x307   : > { %1612 = vmatpush3.bf16.msra.mxu0 %v1467_v59 }
 0x308   : > { %1613 = vmatprep.subr.bf16.mxu0 %v1941_v4 }
 0x309   : > { %v710_v2 = vpop.trf.xlu1 }
 0x30a   : > { %1580 = vmatmul.mubr.msk.bf16.gmra.mrb[12].mxu0 %vm713_vm1, %v710_v2  ;;  %1598 = vmatmul.mubr.msk.bf16.gmra.mrb[12].mxu1 %vm713_vm1, %v710_v2 }
 0x30b   : > { %1614 = vmatpush3.bf16.msra.mxu0 %v1468_v63 }
 0x30c   : > { %1615 = vmatprep.subr.bf16.mxu0 %v1941_v4 }
 0x30d   : > { %v711_v7 = vpop.trf.xlu1 }
 0x30e   : > { %1583 = vmatprep.mubr.msk.bf16.mxu0 %vm713_vm1, %v711_v7  ;;  %1601 = vmatprep.mubr.msk.bf16.mxu1 %vm713_vm1, %v711_v7 }
 0x30f   : > { %1616 = vmatpush3.bf16.msra.mxu0 %v1469_v3 }
 0x310   : > { %1617 = vmatprep.subr.bf16.mxu0 %v1941_v4 }
 0x311   : > { %v712_v11 = vpop.trf.xlu1 }
 0x312   : > { %1584 = vmatmul.mubr.msk.bf16.gmra.mrb[16].mxu0 %vm713_vm1, %v712_v11  ;;  %1602 = vmatmul.mubr.msk.bf16.gmra.mrb[16].mxu1 %vm713_vm1, %v712_v11 }
 0x313   : > { %1618 = vmatpush3.bf16.msra.mxu0 %v1470_v8  ;;  %1621 = vmatprep.mubr.msk.bf16.mxu0 %vm1943_vm0, %v1941_v4 }
 0x314   : > { %1619 = vmatprep.subr.bf16.mxu0 %v1941_v4  ;;  %1641 = vmatprep.mubr.msk.bf16.mxu1 %vm1943_vm0, %v1941_v4  ;;  %vm973_vm0 = vcmp.gt.bf16.partialorder %v2204_v61, 0  ;;  %v1099_v61 = vunpack.c.l.b16 %v1083_v56 }
 0x317   : > { %1620 = vmatpush3.bf16.msra.mxu0 %v1471_v13 }
 0x345   : > { %v1143_v17 = vpop.xlane.xlu1 %1142 }
 0x346   : > { %v1145_v18 = vsub.f32 %v2162_v19, %v1143_v17 }
 0x348   : > { %v1148_v20 = vmul.f32 1.442695, %v1145_v18 }
 0x34a   : > { %1767 = vpow2.f32 %v1148_v20 }
 0x354   : > { %v1768_v22 = vpop.eup %1767 }
 0x355   : > { %v2244_v23 = vpack.c.bf16 %v1768_v22, %v1766_v21 }
 0x357   : > { %1622 = vmatmul.mubr.bf16.vlgmr.msra.gmra.mrb[20].mxu0 %v2244_v23 }
 0x3cd   : > { %v2247_v24 = vpop.f32.mrb[4].mxu0  ;;  %v1591_v25 = vpop.f32.mrb[4].mxu1 }
 0x3ce   : > { %v2249_v26 = vpop.f32.mrb[5].mxu0  ;;  %v869_v27 = vpop.f32.mrb[5].mxu1  ;;  %v934_v32 = vmax.f32 %v1591_v25, 1e-20 }
 0x3cf   : > { %v932_v12 = vmax.f32 %v869_v27, 1e-20  ;;  %v2251_v28 = vpop.f32.mrb[6].mxu0  ;;  %v1592_v29 = vpop.f32.mrb[6].mxu1 }
 0x3d0   : > { %v2253_v19 = vpop.f32.mrb[7].mxu0  ;;  %v872_v31 = vpop.f32.mrb[7].mxu1  ;;  %v935_v34 = vmax.f32 %v1592_v29, 1e-20 }
 0x3d1   : > { %1769 = vrcp.f32 %v932_v12  ;;  %v933_v33 = vmax.f32 %v872_v31, 1e-20 }
 0x3d3   : > { %1771 = vrcp.f32 %v933_v33 }
 0x3d4   : > { %1773 = vrcp.f32 %v934_v32 }
 0x3d5   : > { %v2255_v35 = vpop.f32.mrb[8].mxu0  ;;  %v1595_v36 = vpop.f32.mrb[8].mxu1  ;;  %1775 = vrcp.f32 %v935_v34 }
 0x3d6   : > { %v2257_v37 = vpop.f32.mrb[9].mxu0  ;;  %v885_v38 = vpop.f32.mrb[9].mxu1  ;;  %v938_v42 = vmax.f32 %v1595_v36, 1e-20 }
 0x3d7   : > { %v936_v39 = vmax.f32 %v885_v38, 1e-20  ;;  %v2259_v40 = vpop.f32.mrb[10].mxu0  ;;  %v1596_v41 = vpop.f32.mrb[10].mxu1 }
 0x3d8   : > { %v2261_v43 = vpop.f32.mrb[11].mxu0  ;;  %v888_v46 = vpop.f32.mrb[11].mxu1  ;;  %v939_v51 = vmax.f32 %v1596_v41, 1e-20 }
 0x3d9   : > { %1777 = vrcp.f32 %v936_v39  ;;  %v937_v47 = vmax.f32 %v888_v46, 1e-20 }
 0x3da   : > { %1779 = vrcp.f32 %v938_v42 }
 0x3db   : > { %v1770_v50 = vpop.eup %1769  ;;  %1781 = vrcp.f32 %v937_v47 }
 0x3dc   : > { %982 = vperm.xlu0 %1715, %v1770_v50   ;;  %1783 = vrcp.f32 %v939_v51 }
 0x3dd   : > { %v1772_v54 = vpop.eup %1771  ;;  %v2263_v55 = vpop.f32.mrb[12].mxu0 }
 0x3de   : > { %v1599_v58 = vpop.f32.mrb[12].mxu1  ;;  %987 = vperm.xlu1 %1716, %v1772_v54   ;;  %v2265_v59 = vpop.f32.mrb[13].mxu0 }
 0x3df   : > { %v901_v62 = vpop.f32.mrb[13].mxu1  ;;  %v1774_v63 = vpop.eup %1773  ;;  %v942_v8 = vmax.f32 %v1599_v58, 1e-20 }
 0x3e0   : > { %v940_v2 = vmax.f32 %v901_v62, 1e-20  ;;  %v2267_v3 = vpop.f32.mrb[14].mxu0  ;;  %v1600_v7 = vpop.f32.mrb[14].mxu1  ;;  %992 = vperm.xlu0 %1715, %v1774_v63  }
 0x3e1   : > { %v2269_v11 = vpop.f32.mrb[15].mxu0  ;;  %v904_v13 = vpop.f32.mrb[15].mxu1  ;;  %v943_v17 = vmax.f32 %v1600_v7, 1e-20 }
 0x3e2   : > { %1785 = vrcp.f32 %v940_v2  ;;  %v941_v14 = vmax.f32 %v904_v13, 1e-20  ;;  %v1776_v15 = vpop.eup %1775  ;;  %v1077_v13 = vsel %vm965_vm3, 65537, %v1942_v30 }
 0x3e3   : > { %v1778_v16 = vpop.eup %1777  ;;  %1787 = vrcp.f32 %v942_v8  ;;  %v1076_v8 = vsel %vm964_vm2, 65537, %v1942_v30 }
 0x3e4   : > { %997 = vperm.xlu0 %1715, %v1776_v15   ;;  %1002 = vperm.xlu1 %1716, %v1778_v16   ;;  %1789 = vrcp.f32 %v941_v14  ;;  %v1780_v21 = vpop.eup %1779  ;;  %v1092_v14 = vunpack.c.l.b16 %v1076_v8  ;;  %v1093_v15 = vunpack.c.l.b16 %v1077_v13  ;;  %v1078_v16 = vsel %vm966_vm4, 65537, %v1942_v30 }
 0x3e5   : > { %v2271_v18 = vpop.f32.mrb[16].mxu0  ;;  %v1603_v20 = vpop.f32.mrb[16].mxu1  ;;  %1791 = vrcp.f32 %v943_v17  ;;  %v1079_v17 = vsel %vm967_vm5, 65537, %v1942_v30  ;;  %v1094_v49 = vunpack.c.l.b16 %v1078_v16  ;;  %vm974_vm4 = vcmp.gt.bf16.partialorder %v2211_v0, 0 }
 0x3e6   : > { %v2273_v22 = vpop.f32.mrb[17].mxu0  ;;  %v917_v25 = vpop.f32.mrb[17].mxu1  ;;  %v946_v32 = vmax.f32 %v1603_v20, 1e-20  ;;  %vm2293_vm8 = vcmp.ne.s32.totalorder %v1092_v14, 0  ;;  %vm2297_vm9 = vcmp.ne.s32.totalorder %v1093_v15, 0 }
 0x3e7   : > { %v1782_v27 = vpop.eup %1781  ;;  %v944_v12 = vmax.f32 %v917_v25, 1e-20  ;;  %v2275_v29 = vpop.f32.mrb[18].mxu0  ;;  %vm1472_vm10 = vmpackc.low %vm2297_vm9, %vm2293_vm8  ;;  %vm2311_vm13 = vcmp.ne.s32.totalorder %v1094_v49, 0  ;;  %vm975_vm5 = vcmp.gt.bf16.partialorder %v2213_v1, 0  ;;  %vm2353_vm8 = vcmp.ne.s32.totalorder %v1099_v61, 0 }
 0x3e8   : > { %v1604_v31 = vpop.f32.mrb[18].mxu1  ;;  %1012 = vperm.xlu1 %1716, %v1780_v21   ;;  %1007 = vperm.xlu0 %1715, %v1782_v27   ;;  %v2277_v33 = vpop.f32.mrb[19].mxu0  ;;  %v1095_v21 = vunpack.c.l.b16 %v1079_v17  ;;  %v1087_v14 = vsel %vm975_vm5, 65537, %v1942_v30  ;;  %vm976_vm9 = vcmp.gt.bf16.partialorder %v2220_v5, 0  ;;  %v1805_v61 = vld [vmem:[%s2118_s21] sm:$0xff] }
 0x3e9   : > { %v920_v34 = vpop.f32.mrb[19].mxu1  ;;  %1793 = vrcp.f32 %v944_v12  ;;  %v1784_v38 = vpop.eup %1783  ;;  %v947_v41 = vmax.f32 %v1604_v31, 1e-20  ;;  %v1080_v12 = vsel %vm968_vm6, 65537, %v1942_v30 }
 0x3ea   : > { %v945_v36 = vmax.f32 %v920_v34, 1e-20  ;;  %1795 = vrcp.f32 %v946_v32  ;;  %v1096_v32 = vunpack.c.l.b16 %v1080_v12  ;;  %v1097_v34 = vunpack.c.l.b16 %v1081_v52 }
 0x3eb   : > { %vm2315_vm14 = vcmp.ne.s32.totalorder %v1095_v21, 0 }
 0x3ec   : > { %v1786_v39 = vpop.eup %1785  ;;  %1017 = vperm.xlu0 %1715, %v1784_v38   ;;  %1797 = vrcp.f32 %v945_v36  ;;  %v1082_v36 = vsel %vm970_vm11, 65537, %v1942_v30  ;;  %vm1475_vm1 = vmpackc.low %vm2315_vm14, %vm2311_vm13  ;;  %vm2330_vm2 = vcmp.ne.s32.totalorder %v1096_v32, 0  ;;  %vm2334_vm3 = vcmp.ne.s32.totalorder %v1097_v34, 0 }
 0x3ed   : > { %1022 = vperm.xlu1 %1716, %v1786_v39   ;;  %v1788_v42 = vpop.eup %1787  ;;  %1799 = vrcp.f32 %v947_v41  ;;  %v1098_v60 = vunpack.c.l.b16 %v1082_v36  ;;  %vm1478_vm6 = vmpackc.low %vm2334_vm3, %vm2330_vm2  ;;  %vm978_vm14 = vcmp.gt.bf16.partialorder %v2229_v9, 0 }
 0x3ee   : > { %v1790_v46 = vpop.eup %1789  ;;  %v1090_v52 = vsel %vm978_vm14, 65537, %v1942_v30 }
 0x3ef   : > { %v1792_v47 = vpop.eup %1791  ;;  %vm2349_vm7 = vcmp.ne.s32.totalorder %v1098_v60, 0 }
 0x3f0   : > { %1027 = vperm.xlu0 %1715, %v1790_v46   ;;  %vm1481_vm11 = vmpackc.low %vm2353_vm8, %vm2349_vm7 }
 0x3f1   : > { %1032 = vperm.xlu1 %1716, %v1788_v42  }
 0x3f3   : > { %v1794_v50 = vpop.eup %1793 }
 0x3f4   : > { %1037 = vperm.xlu0 %1715, %v1792_v47   ;;  %v1796_v51 = vpop.eup %1795 }
 0x3f5   : > { %1042 = vperm.xlu1 %1716, %v1794_v50  }
 0x3f6   : > { %v1798_v54 = vpop.eup %1797 }
 0x3f7   : > { %v1800_v58 = vpop.eup %1799 }
 0x3f8   : > { %1047 = vperm.xlu0 %1715, %v1798_v54  }
 0x3f9   : > { %1052 = vperm.xlu1 %1716, %v1796_v51  }
 0x3fc   : > { %1057 = vperm.xlu0 %1715, %v1800_v58  }
 0x42a   : > { %v2279_v62 = vpop.f32.mrb[20].mxu0 }
 0x42b   : > { %v1623_v63 = vpop.f32.mrb[21].mxu0  ;;  %v1289_v42 = vmax.f32 %v2279_v62, 1e-20 }
 0x42c   : > { %v2281_v2 = vpop.f32.mrb[22].mxu0 }
 0x42d   : > { %v1624_v7 = vpop.f32.mrb[23].mxu0  ;;  %v1290_v46 = vmax.f32 %v2281_v2, 1e-20  ;;  %1801 = vrcp.f32 %v1289_v42  ;;  %v1806_v2 = vld [vmem:[%s2118_s21 + $0x8] sm:$0xff] }
 0x42f   : > { %1803 = vrcp.f32 %v1290_v46 }
 0x45b   : > { %v983_v20 = vpop.permute.xlu0 %982 }
 0x45c   : > { %v1060_v25 = vmul.f32 %v983_v20, %v2249_v26  ;;  %v1103_v20 = vunpack.c.l.b16 %v1087_v14 }
 0x45d   : > { %v988_v48 = vpop.permute.xlu1 %987 }
 0x45e   : > { %v1061_v27 = vmul.f32 %v988_v48, %v2253_v19  ;;  %vm2391_vm2 = vcmp.ne.s32.totalorder %v1103_v20, 0 }
 0x45f   : > { %v993_v53 = vpop.permute.xlu0 %992 }
 0x460   : > { %v1473_v31 = vpack.c.bf16 %v1061_v27, %v1060_v25  ;;  %v1062_v57 = vmul.f32 %v2247_v24, %v993_v53  ;;  %v1084_v24 = vsel %vm972_vm15, 65537, %v1942_v30  ;;  %vm979_vm15 = vcmp.gt.bf16.partialorder %v2231_v10, 0 }
 0x461   : > { %v1100_v63 = vunpack.c.l.b16 %v1084_v24  ;;  %v1091_v53 = vsel %vm979_vm15, 65537, %v1942_v30 }
 0x462   : > { %1626 = vmatpush3.bf16.msk.msra.mxu1 %vm1472_vm10, %v1473_v31  ;;  %vm977_vm10 = vcmp.gt.bf16.partialorder %v2222_v6, 0  ;;  %v1088_v6 = vsel %vm976_vm9, 65537, %v1942_v30 }
 0x463   : > { %v1003_v38 = vpop.permute.xlu1 %1002  ;;  %v998_v39 = vpop.permute.xlu0 %997  ;;  %1627 = vmatprep.subr.bf16.mxu1 %v1941_v4  ;;  %vm2368_vm12 = vcmp.ne.s32.totalorder %v1100_v63, 0  ;;  %v1089_v48 = vsel %vm977_vm10, 65537, %v1942_v30  ;;  %v1104_v25 = vunpack.c.l.b16 %v1088_v6 }
 0x464   : > { %v1063_v41 = vmul.f32 %v2251_v28, %v998_v39  ;;  %v1085_v28 = vsel %vm973_vm0, 65537, %v1942_v30  ;;  %v1064_v54 = vmul.f32 %v1003_v38, %v2257_v37  ;;  %v1105_v9 = vunpack.c.l.b16 %v1089_v48 }
 0x465   : > { %v1101_v7 = vunpack.c.l.b16 %v1085_v28 }
 0x466   : > { %v1476_v47 = vpack.c.bf16 %v1063_v41, %v1062_v57  ;;  %vm2408_vm5 = vcmp.ne.s32.totalorder %v1105_v9, 0 }
 0x467   : > { %v1013_v50 = vpop.permute.xlu1 %1012  ;;  %v1008_v51 = vpop.permute.xlu0 %1007  ;;  %vm2372_vm13 = vcmp.ne.s32.totalorder %v1101_v7, 0 }
 0x468   : > { %v1065_v58 = vmul.f32 %v1008_v51, %v2261_v43  ;;  %1628 = vmatpush3.bf16.msk.msra.mxu1 %vm1475_vm1, %v1476_v47  ;;  %v1086_v43 = vsel %vm974_vm4, 65537, %v1942_v30  ;;  %v1066_v15 = vmul.f32 %v2255_v35, %v1013_v50  ;;  %vm1484_vm0 = vmpackc.low %vm2372_vm13, %vm2368_vm12  ;;  %vm2404_vm4 = vcmp.ne.s32.totalorder %v1104_v25, 0 }
 0x469   : > { %1629 = vmatprep.subr.bf16.mxu1 %v1941_v4  ;;  %v1106_v30 = vunpack.c.l.b16 %v1090_v52 }
 0x46a   : > { %v1479_v8 = vpack.c.bf16 %v1065_v58, %v1064_v54 }
 0x46b   : > { %v1018_v1 = vpop.permute.xlu0 %1017  ;;  %vm1122_vm7 = vcmp.ne.s32.totalorder %v1106_v30, 0 }
 0x46c   : > { %v1023_v0 = vpop.permute.xlu1 %1022  ;;  %v1067_v16 = vmul.f32 %v2259_v40, %v1018_v1  ;;  %1630 = vmatpush3.bf16.msk.msra.mxu1 %vm1478_vm6, %v1479_v8  ;;  %v1102_v40 = vunpack.c.l.b16 %v1086_v43  ;;  %vm1490_vm6 = vmpackc.low %vm2408_vm5, %vm2404_vm4 }
 0x46d   : > { %1631 = vmatprep.subr.bf16.mxu1 %v1941_v4  ;;  %v1068_v49 = vmul.f32 %v1023_v0, %v2265_v59 }
 0x46e   : > { %v1482_v35 = vpack.c.bf16 %v1067_v16, %v1066_v15  ;;  %vm2387_vm1 = vcmp.ne.s32.totalorder %v1102_v40, 0 }
 0x46f   : > { %v1028_v45 = vpop.permute.xlu0 %1027  ;;  %vm1487_vm3 = vmpackc.low %vm2391_vm2, %vm2387_vm1 }
 0x470   : > { %v1033_v44 = vpop.permute.xlu1 %1032  ;;  %v1069_v21 = vmul.f32 %v1028_v45, %v2269_v11  ;;  %1632 = vmatpush3.bf16.msk.msra.mxu1 %vm1481_vm11, %v1482_v35 }
 0x471   : > { %1633 = vmatprep.subr.bf16.mxu1 %v1941_v4  ;;  %v1070_v31 = vmul.f32 %v2263_v55, %v1033_v44  ;;  %v1107_v55 = vunpack.c.l.b16 %v1091_v53 }
 0x472   : > { %v1485_v27 = vpack.c.bf16 %v1069_v21, %v1068_v49 }
 0x473   : > { %v1038_v10 = vpop.permute.xlu0 %1037  ;;  %vm1123_vm8 = vcmp.ne.s32.totalorder %v1107_v55, 0 }
 0x474   : > { %v1043_v11 = vpop.permute.xlu1 %1042  ;;  %v1071_v32 = vmul.f32 %v2267_v3, %v1038_v10  ;;  %1634 = vmatpush3.bf16.msk.msra.mxu1 %vm1484_vm0, %v1485_v27  ;;  %vm1493_vm9 = vmpackc.low %vm1123_vm8, %vm1122_vm7 }
 0x475   : > { %1635 = vmatprep.subr.bf16.mxu1 %v1941_v4  ;;  %v1072_v36 = vmul.f32 %v1043_v11, %v2273_v22 }
 0x476   : > { %v1488_v26 = vpack.c.bf16 %v1071_v32, %v1070_v31 }
 0x477   : > { %v1048_v3 = vpop.permute.xlu0 %1047 }
 0x478   : > { %v1073_v38 = vmul.f32 %v1048_v3, %v2277_v33  ;;  %1636 = vmatpush3.bf16.msk.msra.mxu1 %vm1487_vm3, %v1488_v26  ;;  %v1053_v39 = vpop.permute.xlu1 %1052 }
 0x479   : > { %1637 = vmatprep.subr.bf16.mxu1 %v1941_v4  ;;  %v1074_v41 = vmul.f32 %v2271_v18, %v1053_v39  ;;  %v1802_v18 = vpop.eup %1801 }
 0x47a   : > { %v1491_v56 = vpack.c.bf16 %v1073_v38, %v1072_v36  ;;  %v1804_v47 = vpop.eup %1803 }
 0x47b   : > { %v1058_v57 = vpop.permute.xlu0 %1057 }
 0x47c   : > { %v1075_v22 = vmul.f32 %v2275_v29, %v1058_v57  ;;  %1638 = vmatpush3.bf16.msk.msra.mxu1 %vm1490_vm6, %v1491_v56 }
 0x47d   : > { %1639 = vmatprep.subr.bf16.mxu1 %v1941_v4 }
 0x47e   : > { %v1494_v33 = vpack.c.bf16 %v1075_v22, %v1074_v41 }
 0x480   : > { %1640 = vmatpush3.bf16.msk.msra.mxu1 %vm1493_vm9, %v1494_v33 }
 0x483   : > { %1642 = vmatmul.mubr.bf16.vlgmr.msra.gmra.mrb[20].mxu1 %v2244_v23 }
 0x556   : > { %v1282_v29 = vpop.f32.mrb[20].mxu1 }
 0x557   : > { %v1293_v60 = vmul.f32 %v1802_v18, %v1282_v29  ;;  %v1643_v4 = vpop.f32.mrb[21].mxu1 }
 0x558   : > { %v1285_v23 = vpop.f32.mrb[22].mxu1 }
 0x559   : > { %v1295_v24 = vadd.f32 %v1805_v61, %v1293_v60  ;;  %v1294_v62 = vmul.f32 %v1804_v47, %v1285_v23  ;;  %v1644_v28 = vpop.f32.mrb[23].mxu1 }
 0x55b   : > { %1297 = vst [vmem:[%s316_s13] sm:$0xff] %v1295_v24  ;;  %v1296_v50 = vadd.f32 %v1806_v2, %v1294_v62 }
 0x55d   : > { %1298 = vst [vmem:[%s316_s13 + $0x8] sm:$0xff] %v1296_v50 }
 0x55e   : > { %1876 = shalt.err (!%p1873_p11)
}
 0x55f   : > { %s1877_s21 = scalar_lea.hbm %s2433_s29, 256  ;;  %s1881_s19 = scalar_lea.hbm %s2484_s7, 512 }
 0x560   : > { %p1878_p13 = scmp.ne.s32.totalorder %s2433_s29, %s1877_s21  ;;  %p1882_p6 = scmp.lt.u32.totalorder %s2433_s29, %s2484_s7 }
 0x561   : > { %p1883_p9 = scmp.lt.u32.totalorder %s1881_s19, %s1877_s21  ;;  %p1885_p12 = scmp.lt.u32.totalorder %s1877_s21, %s2433_s29 }
 0x562   : > { %p1879_p0 = pnand %p1878_p13, %p2526_p1 }
 0x563   : > { %p1884_p10 = por %p1883_p9, %p1882_p6 }
 0x564   : > { %p1880_p5 = pneg %p1879_p0 }
 0x565   : > { %p1886_p2 = por %p1885_p12, %p1884_p10 }
 0x567   : > { %p1887_p3 = pnand %p1886_p2, %p1880_p5 }
 0x569   : > { %1890 = shalt.err (!%p1887_p3)
}
 0x56a   : > { %s1946_s20 = smov 128   ;;  %s1947_s22 = smov 8  }
 0x56b   : > { %1653 = dma.vmem_to_hbm [thread:$0]  (%p2526_p1), %s2428_s18, 256, %s2433_s29, %s2436_s28, %s1946_s20, %s1946_s20, %s1947_s22  }
 0x56c PF: > { %p1670_p4 = scmp.ge.s32.totalorder %s1933_s27, 2  ;;  %s1328_s23 = sand.u32 1, %s1921_s24  }
 0x56d   : > { %p2527_p7 = scmp.ne.s32.totalorder %s2490_s12, 0  ;;  %s1329_s8 = scalar_lea.sflag [#allocation4], %s1328_s23 }
 0x56f   : > { %p1663_p8 = pnand %p1670_p4, %p2527_p7 }
 0x571   : > { %1916 = dma.done.wait (!%p1663_p8), %s1329_s8, 256  }
 0x572   : > { %1918 = vsyncadd (!%p1663_p8), %s1329_s8, 4294967040  ;;  %s2528_s9 = sld [smem:[#allocation11_spill]]  ;;  %p19_p11 = scmp.ge.s32.totalorder %s2013_s30, 4  }
 0x573   : > { %s2529_s24 = smov %s1925_s25  ;;  %s2530_s25 = smov %s1929_s26 }
 0x574   : > { %s2532_s27 = smov %s2013_s30  ;;  %21 = sbr.rel (!%p19_p11) target bundleno = 5 (0x5), region = 95 }
 0x578   : > { %s2531_s26 = smov %s2528_s9 }
 0x57b   :  { %1334 = vsyncpa [#allocation3], 1 }
 0x57c   :  { %1336 = vsyncpa [#allocation3 + $0x1], 1 }
 0x57d   :  { %1337 = vsyncpa [#allocation6], 1 }
 0x57e   :  { %1338 = vsyncpa [#allocation4], 1 }
 0x57f   :  { %1340 = vsyncpa [#allocation4 + $0x1], 1 }

// kernel: tpu_custom_call.1
= control target key start
LH: loop header
LB: loop body
LE: loop exit
PB: predicated region body
PF: predicated region fallthrough
CT: control target
= control target key end

     0   :  { %12 = vsyncpa [#allocation3], 0  ;;  %s2477_s0 = inlined_call_operand.vmem [shape: f32[2,16,128], index: 0, kind: input, shape index: {}]   ;;  %s2478_s1 = inlined_call_operand.vmem [shape: f32[2,16,1], index: 1, kind: input, shape index: {}]   ;;  %s2479_s2 = inlined_call_operand.vmem [shape: f32[1,128], index: 2, kind: input, shape index: {}]   ;;  %s2480_s3 = inlined_call_operand.vmem [shape: f32[1,128], index: 3, kind: input, shape index: {}]   ;;  %s2481_s4 = inlined_call_operand.hbm [shape: bf16[128,384], index: 4, kind: input, shape index: {}]   ;;  %s2482_s5 = inlined_call_operand.vmem [shape: f32[1,384], index: 5, kind: input, shape index: {}]   ;;  %s2483_s6 = inlined_call_operand.hbm [shape: bf16[128,128], index: 6, kind: input, shape index: {}]   ;;  %s2484_s7 = inlined_call_operand.hbm [shape: f32[2,16,128], index: 7, kind: output, shape index: {}]  }
   0x1   :  { %13 = vsyncpa [#allocation6], 0 }
   0x2   :  { %14 = vsyncpa [#allocation4], 0 }
   0x3   :  { %16 = vsyncpa [#allocation4 + $0x1], 0  ;;  %s1988_s24 = smov 0   ;;  %s1990_s25 = smov 0  }
   0x4   :  { %s1992_s26 = smov 0   ;;  %s1994_s27 = smov 0  }
   0x5 LB: > { %s2009_s28 = sadd.s32 4294967295, %s1933_s27   ;;  %s1409_s29 = sadd.s32 4294967294, %s1933_s27   ;;  %s1933_s27 = sphi %s1994_s27, %s2532_s27   ;;  %s1929_s26 = sphi %s1992_s26, %s2531_s26   ;;  %s1925_s25 = sphi %s1990_s25, %s2530_s25   ;;  %s1921_s24 = sphi %s1988_s24, %s2529_s24  }
   0x6   : > { %s2013_s30 = sadd.s32 1, %s1933_s27   ;;  %s186_s8 = sadd.s32 1, %s1929_s26 }
   0x7   : > { %s183_s9 = ssub.s32 %s1933_s27, %s2013_s30  ;;  %p196_p0 = scmp.ne.s32.totalorder %s1929_s26, %s1925_s25 }
   0x8   : > { %p184_p1 = scmp.eq.s32.totalorder %s183_s9, 0  ;;  %p197_p2 = scmp.eq.s32.totalorder %s2009_s28, 1 }
   0x9   : > { %p202_p3 = scmp.ne.s32.totalorder %s1925_s25, %s1921_s24  ;;  %p203_p4 = scmp.eq.s32.totalorder %s1409_s29, 1 }
   0xa   : > { %s2024_s10 = scalar_select %p184_p1, %s1929_s26, %s186_s8  }
   0xb   : > { %p2026_p5 = por %p197_p2, %p196_p0  ;;  %p2030_p6 = por %p203_p4, %p202_p3 }
   0xc   : > { %2488 = sst [smem:[#allocation11_spill]] %s2024_s10  ;;  %p1410_p7 = scmp.ge.s32.totalorder %s1933_s27, 1 }
   0xd   : > { %s2489_s11 = scalar_select %p2026_p5, 1, 0 }
   0xe   : > { %s2490_s12 = scalar_select %p2030_p6, 1, 0 }
   0xf   : > { %p210_p8 = scmp.lt.s32.totalorder %s1933_s27, 3  ;;  %p2485_p9 = scmp.eq.s32.totalorder %s2009_s28, 0 }
  0x10   : > { %s1935_s14 = smov [#allocation2]   ;;  %s1936_s17 = smov [#allocation5]  }
  0x11   : > { %p2037_p10 = pnand %p1410_p7, %p210_p8  ;;  %s228_s15 = sshll.u32 %s1935_s14, 4  ;;  %s229_s15 = int_to_ptr.vmem [resolvable:$true] %s228_s15 }
  0x12   : > { %s244_s18 = sshll.u32 %s1936_s17, 4  ;;  %s1807_s21 = scalar_lea.hbm %s2481_s4, 3072  ;;  %s2049_s18 = int_to_ptr.vmem [resolvable:$true] %s244_s18 }
  0x13   : > { %s2491_s13 = scalar_select %p2037_p10, 1, 0 }
  0x14   : > { %p1655_p11 = pneg %p2037_p10  ;;  %p1808_p13 = scmp.ne.s32.totalorder %s2481_s4, %s1807_s21 }
  0x15   : > { %p1814_p3 = scmp.lt.u32.totalorder %s1807_s21, %s2481_s4 }
  0x16   : > { %p2045_p12 = pnand %p2485_p9, %p1655_p11 }
  0x18   : > { %p1809_p0 = pneg %p2045_p12 }
  0x1a   : > { %p1810_p1 = pnand %p1809_p0, %p1808_p13 }
  0x1c   : > { %p1811_p2 = pneg %p1810_p1 }
  0x1e   : > { %p1816_p4 = pnand %p1814_p3, %p1811_p2 }
  0x20   : > { %1819 = shalt.err (!%p1816_p4)
}
  0x21   : > { %s1820_s9 = scalar_lea.vmem %s229_s15, 3072  ;;  %p1828_p9 = scmp.lt.s32.totalorder %s229_s15, %s229_s15 }
  0x22   : > { %p1821_p7 = scmp.ne.s32.totalorder %s229_s15, %s1820_s9  ;;  %p1829_p6 = scmp.lt.s32.totalorder %s1820_s9, %s1820_s9 }
  0x24   : > { %p1823_p8 = pnand %p1821_p7, %p1809_p0  ;;  %p1830_p5 = por %p1829_p6, %p1828_p9 }
  0x26   : > { %p1824_p11 = pneg %p1823_p8 }
  0x28   : > { %p1831_p10 = pnand %p1830_p5, %p1824_p11 }
  0x2a   : > { %1834 = shalt.err (!%p1831_p10)
}
  0x2b   : > { %s1937_s14 = smov 192   ;;  %s1938_s17 = smov 12  }
  0x2c   : > { %1658 = dma.hbm_to_vmem [thread:$0]  (!%p2045_p12), %s2481_s4, 3072, %s229_s15, [#allocation3], %s1937_s14, %s1937_s14, %s1938_s17  }
  0x2d   : > { %s1835_s23 = scalar_lea.hbm %s2483_s6, 1024 }
  0x2e   : > { %p1836_p13 = scmp.ne.s32.totalorder %s2483_s6, %s1835_s23  ;;  %p1842_p9 = scmp.lt.u32.totalorder %s1835_s23, %s2483_s6 }
  0x30   : > { %p1838_p5 = pnand %p1836_p13, %p1809_p0 }
  0x32   : > { %p1839_p6 = pneg %p1838_p5 }
  0x34   : > { %p1844_p10 = pnand %p1842_p9, %p1839_p6 }
  0x36   : > { %1847 = shalt.err (!%p1844_p10)
}
  0x37   : > { %s1848_s15 = scalar_lea.vmem %s2049_s18, 1024  ;;  %p1856_p4 = scmp.lt.s32.totalorder %s2049_s18, %s2049_s18 }
  0x38   : > { %p1849_p1 = scmp.ne.s32.totalorder %s2049_s18, %s1848_s15  ;;  %p1857_p7 = scmp.lt.s32.totalorder %s1848_s15, %s1848_s15 }
  0x3a   : > { %p1851_p2 = pnand %p1849_p1, %p1809_p0  ;;  %p1858_p8 = por %p1857_p7, %p1856_p4 }
  0x3c   : > { %p1852_p3 = pneg %p1851_p2 }
  0x3e   : > { %p1859_p11 = pnand %p1858_p8, %p1852_p3 }
  0x40   : > { %1862 = shalt.err (!%p1859_p11)
}
  0x41   : > { %s1939_s10 = smov 64   ;;  %s1940_s14 = smov 4  }
  0x42   : > { %1661 = dma.hbm_to_vmem [thread:$0]  (!%p2045_p12), %s2483_s6, 1024, %s2049_s18, [#allocation6], %s1939_s10, %s1939_s10, %s1940_s14  }
  0x43   : > { %p2493_p13 = scmp.ne.s32.totalorder %s2491_s13, 0 }
  0x44   : > { %p2494_p0 = scmp.eq.s32.totalorder (!%p2493_p13), %s2009_s28, 0 }
  0x45   : > { %276 = sbr.rel (%p2493_p13) target bundleno = 1388 (0x56c), region = 48 }
  0x4c   : > { %1908 = dma.done.wait (%p2494_p0), [#allocation3], 3072   ;;  %p2495_p5 = pmov %p2494_p0 }
  0x4d   : > { %p2496_p6 = pmov %p2494_p0 }
  0x4e   : > { %1910 = vsyncadd (%p2495_p5), [#allocation3], 4294964224 }
  0x4f   : > { %1912 = dma.done.wait (%p2496_p6), [#allocation6], 1024   ;;  %p2497_p9 = pmov %p2494_p0 }
  0x50   : > { %p317_p10 = scmp.lt.s32.totalorder %s2009_s28, 1  ;;  %v1717_v2 = vld [vmem:[#allocation2 + $0x4] ss:$12 sps:$4 sm:$0xff]   ;;  %v1719_v3 = vld [vmem:[#allocation2] ss:$12 sps:$4 sm:$0xff]   ;;  %v1941_v4 = vmov 0.0   ;;  %v427_v60 = vlaneseq }
  0x51   : > { %1914 = vsyncadd (%p2497_p9), [#allocation6], 4294966272  ;;  %1549 = vmatprep.subr.bf16.mxu1 %v1941_v4  ;;  %v1720_v5 = vld [vmem:[#allocation2 + $0x8] ss:$12 sps:$4 sm:$0xff]   ;;  %570 = vmatprep.subr.bf16.mxu0 %v1717_v2  ;;  %v1723_v15 = vld [vmem:[#allocation2 + $0x18] ss:$12 sps:$4 sm:$0xff]  }
  0x52   : > { %s2110_s16 = scalar_select %p317_p10, %s2009_s28, 1  ;;  %v1721_v6 = vld [vmem:[#allocation2 + $0x1c] ss:$12 sps:$4 sm:$0xff]   ;;  %571 = vmatpush1.bf16.msra.mxu0 %v1719_v3  ;;  %1550 = vmatpush3.bf16.msra.mxu1 %v1720_v5  ;;  %v1724_v16 = vld [vmem:[#allocation2 + $0x20] ss:$12 sps:$4 sm:$0xff]   ;;  %v1942_v30 = vmov 0  }
  0x53   : > { %572 = vmatprep.subr.bf16.mxu0 %v1721_v6  ;;  %1551 = vmatprep.subr.bf16.mxu1 %v1941_v4  ;;  %v1725_v17 = vld [vmem:[#allocation2 + $0x34] ss:$12 sps:$4 sm:$0xff]   ;;  %v1727_v18 = vld [vmem:[#allocation2 + $0x30] ss:$12 sps:$4 sm:$0xff]   ;;  %v1728_v19 = vld [vmem:[#allocation2 + $0x38] ss:$12 sps:$4 sm:$0xff]  }
  0x54   : > { %s1501_s13 = sshll.u32 %s2110_s16, 4  ;;  %v1729_v20 = vld [vmem:[#allocation2 + $0x4c] ss:$12 sps:$4 sm:$0xff]   ;;  %v1731_v21 = vld [vmem:[#allocation2 + $0x48] ss:$12 sps:$4 sm:$0xff]   ;;  %602 = vmatprep.mubr.bf16.mxu0 %v1942_v30  ;;  %vm1943_vm0 = vmmov 0   ;;  %1715 = vset.pattern.permute.xlu0 %v1942_v30 }
  0x55   : > { %s2118_s21 = scalar_lea.vmem %s2477_s0, %s1501_s13  ;;  %v1732_v22 = vld [vmem:[#allocation2 + $0x50] ss:$12 sps:$4 sm:$0xff]   ;;  %v1735_v24 = vld [vmem:[#allocation2 + $0x60] ss:$12 sps:$4 sm:$0xff]   ;;  %v1736_v25 = vld [vmem:[#allocation2 + $0x68] ss:$12 sps:$4 sm:$0xff]   ;;  %1565 = vmatprep.mubr.msk.bf16.mxu1 %vm1943_vm0, %v1941_v4  ;;  %1716 = vset.pattern.permute.xlu1 %v1942_v30  ;;  %s326_s29 = scalar_lea.vmem %s2478_s1, %s1501_s13 }
  0x56   : > { %v331_v0 = vld [vmem:[%s2118_s21] sm:$0xff]  ;;  %v332_v1 = vld [vmem:[%s2118_s21 + $0x8] sm:$0xff]  ;;  %573 = vmatpush1.bf16.msra.mxu0 %v1723_v15  ;;  %1552 = vmatpush3.bf16.msra.mxu1 %v1724_v16  ;;  %v1743_v31 = vld [vmem:[#allocation2 + $0x90] ss:$12 sps:$4 sm:$0xff]   ;;  %v1944_v59 = vmov 1065369472  }
  0x57   : > { %351 = vadd.xlane.f32.xlu0 %v331_v0  ;;  %1553 = vmatprep.subr.bf16.mxu1 %v1941_v4  ;;  %v1733_v23 = vld [vmem:[#allocation2 + $0x64] ss:$12 sps:$4 sm:$0xff]   ;;  %v1737_v26 = vld [vmem:[#allocation2 + $0x7c] ss:$12 sps:$4 sm:$0xff]   ;;  %v1740_v28 = vld [vmem:[#allocation2 + $0x80] ss:$12 sps:$4 sm:$0xff]  }
  0x58   : > { %574 = vmatprep.subr.bf16.mxu0 %v1725_v17  ;;  %v1739_v27 = vld [vmem:[#allocation2 + $0x78] ss:$12 sps:$4 sm:$0xff]   ;;  %v1741_v29 = vld [vmem:[#allocation2 + $0x94] ss:$12 sps:$4 sm:$0xff]   ;;  %v1748_v35 = vld [vmem:[#allocation2 + $0xb0] ss:$12 sps:$4 sm:$0xff]  }
  0x59   : > { %v1744_v32 = vld [vmem:[#allocation2 + $0x98] ss:$12 sps:$4 sm:$0xff]   ;;  %v1747_v34 = vld [vmem:[#allocation2 + $0xa8] ss:$12 sps:$4 sm:$0xff]   ;;  %v1422_v50 = vld [vmem:[%s2479_s2] ss:$0 sm:$0xff] }
  0x5a   : > { %575 = vmatpush1.bf16.msra.mxu0 %v1727_v18  ;;  %1554 = vmatpush3.bf16.msra.mxu1 %v1728_v19  ;;  %v1745_v33 = vld [vmem:[#allocation2 + $0xac] ss:$12 sps:$4 sm:$0xff]   ;;  %v333_v36 = vld [vmem:[%s326_s29] sm:$0xff]  ;;  %v428_v62 = vshrl.u32 %v427_v60, 7  ;;  %vm713_vm1 = vcmask 130048   ;;  %s314_s19 = sand.u32 1, %s1925_s25  }
  0x5b   : > { %353 = vadd.xlane.f32.xlu0 %v332_v1  ;;  %1555 = vmatprep.subr.bf16.mxu1 %v1941_v4  ;;  %v334_v37 = vld [vmem:[%s326_s29 + $0x8] sm:$0xff]  ;;  %v654_v38 = vsub.f32 1.0, %v333_v36  ;;  %v1423_v54 = vld [vmem:[%s2480_s3] ss:$0 sm:$0xff]  ;;  %s1417_s16 = sshll.u32 %s314_s19, 4  ;;  %s1503_s20 = sshll.u32 %s2009_s28, 8 }
  0x5c   : > { %576 = vmatprep.subr.bf16.mxu0 %v1729_v20  ;;  %v655_v39 = vsub.f32 1.0, %v334_v37  ;;  %v429_v63 = vsub.s32 0, %v428_v62  ;;  %v425_v2 = vld [vmem:[%s2482_s5] sm:$0x7]  ;;  %v433_v3 = vsub.s32 1, %v428_v62  ;;  %s316_s13 = scalar_lea.vmem [#allocation7], %s1417_s16  ;;  %s2433_s29 = scalar_lea.hbm %s2484_s7, %s1503_s20 }
  0x5d   : > { %v656_v40 = vmul.f32 -1000000.0, %v654_v38  ;;  %v2202_v60 = vld [vmem:[#allocation5 + $0x20] sm:$0xf]  ;;  %s1313_s18 = sshll.u32 %s316_s13, 4  ;;  %s2436_s28 = scalar_lea.sflag [#allocation4], %s314_s19  ;;  %s2428_s18 = int_to_ptr.vmem [resolvable:$true] %s1313_s18 }
  0x5e   : > { %577 = vmatpush1.bf16.msra.mxu0 %v1731_v21  ;;  %1556 = vmatpush3.bf16.msra.mxu1 %v1732_v22  ;;  %v657_v41 = vmul.f32 -1000000.0, %v655_v39  ;;  %v430_v5 = vrot.slane %v425_v2, %v429_v63  ;;  %vm972_vm15 = vcmp.gt.bf16.partialorder %v2202_v60, 0  ;;  %s1863_s8 = scalar_lea.vmem %s2428_s18, 256  ;;  %p2526_p1 = scmp.ne.s32.totalorder %s2489_s11, 0 }
  0x5f   : > { %1557 = vmatprep.subr.bf16.mxu1 %v1941_v4  ;;  %578 = vmatprep.subr.bf16.mxu0 %v1733_v23  ;;  %p1864_p12 = scmp.ne.s32.totalorder %s2428_s18, %s1863_s8  ;;  %s1945_s9 = smov [#allocation7]  }
  0x60   : > { %s1867_s15 = sshll.u32 %s1945_s9, 4  ;;  %s1868_s15 = int_to_ptr.vmem [resolvable:$false] %s1867_s15 }
  0x61   : > { %p1865_p2 = pnand %p1864_p12, %p2526_p1  ;;  %s1869_s10 = scalar_lea.vmem %s1868_s15, 512 }
  0x62   : > { %579 = vmatpush1.bf16.msra.mxu0 %v1735_v24  ;;  %1558 = vmatpush3.bf16.msra.mxu1 %v1736_v25  ;;  %p1870_p4 = scmp.lt.s32.totalorder %s2428_s18, %s1868_s15  ;;  %p1871_p7 = scmp.lt.s32.totalorder %s1869_s10, %s1863_s8 }
  0x63   : > { %580 = vmatprep.subr.bf16.mxu0 %v1737_v26  ;;  %1559 = vmatprep.subr.bf16.mxu1 %v1941_v4  ;;  %p1866_p3 = pneg %p1865_p2 }
  0x64   : > { %p1872_p8 = por %p1871_p7, %p1870_p4 }
  0x66   : > { %581 = vmatpush1.bf16.msra.mxu0 %v1739_v27  ;;  %1560 = vmatpush3.bf16.msra.mxu1 %v1740_v28  ;;  %p1873_p11 = pnand %p1872_p8, %p1866_p3 }
  0x67   : > { %582 = vmatprep.subr.bf16.mxu0 %v1741_v29  ;;  %1561 = vmatprep.subr.bf16.mxu1 %v1941_v4 }
  0x6a   : > { %583 = vmatpush1.bf16.msra.mxu0 %v1743_v31  ;;  %1562 = vmatpush3.bf16.msra.mxu1 %v1744_v32 }
  0x6b   : > { %584 = vmatprep.subr.bf16.mxu0 %v1745_v33  ;;  %1563 = vmatprep.subr.bf16.mxu1 %v1941_v4 }
  0x6e   : > { %585 = vmatpush1.bf16.msra.mxu0 %v1747_v34  ;;  %1564 = vmatpush3.bf16.msra.mxu1 %v1748_v35 }
  0x6f   : > { %1587 = vmatprep.subr.bf16.mxu1 %v1944_v59 }
  0x71   : > { %660 = vperm.xlu0 %1715, %v656_v40  }
  0x75   : > { %672 = vperm.xlu0 %1715, %v333_v36  }
  0x79   : > { %677 = vperm.xlu0 %1715, %v334_v37  }
  0xe4   : > { %v352_v7 = vpop.xlane.xlu0 %351 }
  0xe5   : > { %v356_v8 = vmul.f32 0.0078125, %v352_v7  ;;  %v434_v7 = vrot.slane %v425_v2, %v433_v3 }
  0xe7   : > { %v2124_v9 = vsub.f32 %v331_v0, %v356_v8  ;;  %v437_v0 = vsub.s32 2, %v428_v62 }
  0xe8   : > { %v354_v10 = vpop.xlane.xlu0 %353 }
  0xe9   : > { %v357_v11 = vmul.f32 0.0078125, %v354_v10  ;;  %v360_v12 = vmul.f32 %v2124_v9, %v2124_v9  ;;  %v438_v6 = vrot.slane %v425_v2, %v437_v0  ;;  %v2211_v0 = vld [vmem:[#allocation5 + $0x28] sm:$0xf] }
  0xeb   : > { %v2128_v13 = vsub.f32 %v332_v1, %v357_v11  ;;  %362 = vadd.xlane.f32.xlu1 %v360_v12 }
  0xed   : > { %v361_v14 = vmul.f32 %v2128_v13, %v2128_v13 }
  0xef   : > { %364 = vadd.xlane.f32.xlu1 %v361_v14 }
  0xf0   : > { %v661_v61 = vpop.permute.xlu0 %660 }
  0xf4   : > { %v673_v1 = vpop.permute.xlu0 %672 }
  0xf8   : > { %v678_v8 = vpop.permute.xlu0 %677 }
 0x100   : > { %665 = vperm.xlu1 %1716, %v657_v41  }
 0x178   : > { %v363_v42 = vpop.xlane.xlu1 %362 }
 0x179   : > { %v366_v43 = vmul.f32 0.0078125, %v363_v42 }
 0x17b   : > { %v368_v44 = vadd.f32 1e-05, %v366_v43 }
 0x17c   : > { %v365_v45 = vpop.xlane.xlu1 %364 }
 0x17d   : > { %1757 = vrsqrt.f32 %v368_v44  ;;  %v367_v46 = vmul.f32 0.0078125, %v365_v45  ;;  %v2167_v44 = vld [vmem:[#allocation5] sm:$0xf]  ;;  %v2169_v45 = vld [vmem:[#allocation5 + $0x4] sm:$0xf] }
 0x17e   : > { %vm964_vm2 = vcmp.gt.bf16.partialorder %v2167_v44, 0  ;;  %vm965_vm3 = vcmp.gt.bf16.partialorder %v2169_v45, 0 }
 0x17f   : > { %v369_v47 = vadd.f32 1e-05, %v367_v46 }
 0x181   : > { %1759 = vrsqrt.f32 %v369_v47  ;;  %v1464_v47 = vcombine.low %v2167_v44, %v2169_v45 }
 0x187   : > { %v1758_v48 = vpop.eup %1757 }
 0x188   : > { %v372_v49 = vmul.f32 %v1758_v48, %v2124_v9  ;;  %v666_v9 = vpop.permute.xlu1 %665  ;;  %v2175_v48 = vld [vmem:[#allocation5 + $0x8] sm:$0xf] }
 0x189   : > { %vm966_vm4 = vcmp.gt.bf16.partialorder %v2175_v48, 0 }
 0x18a   : > { %v381_v53 = vmul.f32 %v1422_v50, %v372_v49  ;;  %v2177_v49 = vld [vmem:[#allocation5 + $0xc] sm:$0xf] }
 0x18b   : > { %v1760_v51 = vpop.eup %1759  ;;  %vm967_vm5 = vcmp.gt.bf16.partialorder %v2177_v49, 0 }
 0x18c   : > { %v373_v52 = vmul.f32 %v1760_v51, %v2128_v13  ;;  %v390_v56 = vadd.f32 %v1423_v54, %v381_v53  ;;  %v1465_v51 = vcombine.low %v2175_v48, %v2177_v49  ;;  %v2186_v53 = vld [vmem:[#allocation5 + $0x14] sm:$0xf] }
 0x18d   : > { %vm969_vm7 = vcmp.gt.bf16.partialorder %v2186_v53, 0 }
 0x18e   : > { %v382_v55 = vmul.f32 %v1422_v50, %v373_v52  ;;  %v2184_v52 = vld [vmem:[#allocation5 + $0x10] sm:$0xf] }
 0x18f   : > { %vm968_vm6 = vcmp.gt.bf16.partialorder %v2184_v52, 0 }
 0x190   : > { %v391_v57 = vadd.f32 %v1423_v54, %v382_v55  ;;  %v1466_v55 = vcombine.low %v2184_v52, %v2186_v53  ;;  %v1081_v52 = vsel %vm969_vm7, 65537, %v1942_v30 }
 0x192   : > { %v392_v58 = vpack.c.bf16 %v391_v57, %v390_v56  ;;  %v2193_v56 = vld [vmem:[#allocation5 + $0x18] sm:$0xf]  ;;  %v2195_v57 = vld [vmem:[#allocation5 + $0x1c] sm:$0xf] }
 0x193   : > { %vm970_vm11 = vcmp.gt.bf16.partialorder %v2193_v56, 0  ;;  %vm971_vm12 = vcmp.gt.bf16.partialorder %v2195_v57, 0 }
 0x194   : > { %603 = vmatmul.mubr.bf16.vlgmr.msra.gmra.mrb[0].mxu0 %v392_v58  ;;  %1566 = vmatmul.mubr.bf16.vlgmr.msra.gmra.mrb[0].mxu1 %v392_v58 }
 0x195   : > { %1588 = vmatpush3.bf16.msra.mxu1 %v1944_v59  ;;  %v1467_v59 = vcombine.low %v2193_v56, %v2195_v57  ;;  %v1083_v56 = vsel %vm971_vm12, 65537, %v1942_v30 }
 0x196   : > { %1625 = vmatprep.subr.bf16.mxu1 %v1941_v4 }
 0x267   : > { %v604_v10 = vpop.f32.mrb[0].mxu0  ;;  %v647_v11 = vpop.f32.mrb[0].mxu1 }
 0x268   : > { %v2160_v12 = vadd.f32 %v604_v10, %v430_v5  ;;  %v648_v13 = vadd.f32 %v647_v11, %v438_v6  ;;  %v606_v14 = vpop.f32.mrb[1].mxu0  ;;  %v1567_v15 = vpop.f32.mrb[1].mxu1  ;;  %v2231_v10 = vld [vmem:[#allocation5 + $0x3c] sm:$0xf] }
 0x269   : > { %v607_v16 = vadd.f32 %v606_v14, %v434_v7  ;;  %v608_v17 = vpop.f32.mrb[2].mxu0  ;;  %v650_v18 = vpop.f32.mrb[2].mxu1 }
 0x26a   : > { %v2162_v19 = vadd.f32 %v608_v17, %v430_v5  ;;  %v651_v20 = vadd.f32 %v650_v18, %v438_v6  ;;  %v610_v21 = vpop.f32.mrb[3].mxu0  ;;  %v1568_v22 = vpop.f32.mrb[3].mxu1  ;;  %1140 = vmax.xlane.f32.xlu0 %v2160_v12  ;;  %v680_v24 = vmul.f32 %v673_v1, %v648_v13  ;;  %v2213_v1 = vld [vmem:[#allocation5 + $0x2c] sm:$0xf]  ;;  %v2220_v5 = vld [vmem:[#allocation5 + $0x30] sm:$0xf] }
 0x26b   : > { %v611_v23 = vadd.f32 %v610_v21, %v434_v7  ;;  %v668_v26 = vadd.f32 %v661_v61, %v607_v16  ;;  %v2204_v61 = vld [vmem:[#allocation5 + $0x24] sm:$0xf]  ;;  %v1469_v3 = vcombine.low %v2211_v0, %v2213_v1  ;;  %v2222_v6 = vld [vmem:[#allocation5 + $0x34] sm:$0xf] }
 0x26c   : > { %v681_v25 = vmul.f32 %v678_v8, %v651_v20  ;;  %v1468_v63 = vcombine.low %v2202_v60, %v2204_v61  ;;  %v1470_v8 = vcombine.low %v2220_v5, %v2222_v6 }
 0x26d   : > { %v669_v27 = vadd.f32 %v666_v9, %v611_v23  ;;  %v2229_v9 = vld [vmem:[#allocation5 + $0x38] sm:$0xf] }
 0x26e   : > { %v696_v28 = vpack.c.bf16 %v681_v25, %v680_v24  ;;  %v1471_v13 = vcombine.low %v2229_v9, %v2231_v10 }
 0x26f   : > { %v682_v29 = vmax.f32 %v668_v26, %v669_v27 }
 0x270   : > { %1569 = vmatprep.subr.bf16.mxu0 %v696_v28 }
 0x271   : > { %v683_v31 = vrot.slane %v682_v29, 4  ;;  %1570 = vmatpush3.bf16.msra.mxu0 %v696_v28 }
 0x272   : > { %1605 = vmatprep.subr.bf16.mxu0 %v1941_v4 }
 0x273   : > { %v684_v32 = vmax.f32 %v682_v29, %v683_v31 }
 0x275   : > { %v685_v33 = vrot.slane %v684_v32, 2 }
 0x277   : > { %v686_v34 = vmax.f32 %v684_v32, %v685_v33 }
 0x279   : > { %v687_v35 = vrot.slane %v686_v34, 1 }
 0x27b   : > { %v688_v36 = vmax.f32 %v686_v34, %v687_v35 }
 0x27d   : > { %v689_v37 = vsub.f32 %v668_v26, %v688_v36  ;;  %v690_v38 = vsub.f32 %v669_v27, %v688_v36 }
 0x27f   : > { %v691_v39 = vmul.f32 1.442695, %v689_v37  ;;  %v693_v40 = vmul.f32 1.442695, %v690_v38 }
 0x281   : > { %1761 = vpow2.f32 %v691_v39 }
 0x282   : > { %1763 = vpow2.f32 %v693_v40 }
 0x28b   : > { %v1762_v41 = vpop.eup %1761 }
 0x28c   : > { %v1764_v42 = vpop.eup %1763 }
 0x28d   : > { %v695_v43 = vpack.c.bf16 %v1764_v42, %v1762_v41 }
 0x28f   : > { %697 = vxpose.xlu1.c.b16.start.end [1/1] (short) %v695_v43, 128 }
 0x2b8   : > { %1142 = vmax.xlane.f32.xlu1 %v2162_v19 }
 0x2f5   : > { %v705_v46 = vpop.trf.xlu1 }
 0x2f6   : > { %1571 = vmatprep.mubr.msk.bf16.mxu0 %vm713_vm1, %v705_v46  ;;  %1589 = vmatprep.mubr.msk.bf16.mxu1 %vm713_vm1, %v705_v46 }
 0x2f7   : > { %v1141_v14 = vpop.xlane.xlu0 %1140 }
 0x2f8   : > { %v1144_v15 = vsub.f32 %v2160_v12, %v1141_v14 }
 0x2f9   : > { %v706_v50 = vpop.trf.xlu1 }
 0x2fa   : > { %1572 = vmatmul.mubr.msk.bf16.vlgmr.msra.gmra.mrb[4].mxu0 %vm713_vm1, %v706_v50  ;;  %1590 = vmatmul.mubr.msk.bf16.vlgmr.msra.gmra.mrb[4].mxu1 %vm713_vm1, %v706_v50  ;;  %v1146_v16 = vmul.f32 1.442695, %v1144_v15 }
 0x2fb   : > { %1606 = vmatpush3.bf16.msra.mxu0 %v1464_v47 }
 0x2fc   : > { %1607 = vmatprep.subr.bf16.mxu0 %v1941_v4  ;;  %1765 = vpow2.f32 %v1146_v16 }
 0x2fd   : > { %v707_v54 = vpop.trf.xlu1 }
 0x2fe   : > { %1575 = vmatprep.mubr.msk.bf16.mxu0 %vm713_vm1, %v707_v54  ;;  %1593 = vmatprep.mubr.msk.bf16.mxu1 %vm713_vm1, %v707_v54 }
 0x2ff   : > { %1608 = vmatpush3.bf16.msra.mxu0 %v1465_v51 }
 0x300   : > { %1609 = vmatprep.subr.bf16.mxu0 %v1941_v4 }
 0x301   : > { %v708_v58 = vpop.trf.xlu1 }
 0x302   : > { %1576 = vmatmul.mubr.msk.bf16.gmra.mrb[8].mxu0 %vm713_vm1, %v708_v58  ;;  %1594 = vmatmul.mubr.msk.bf16.gmra.mrb[8].mxu1 %vm713_vm1, %v708_v58 }
 0x303   : > { %1610 = vmatpush3.bf16.msra.mxu0 %v1466_v55 }
 0x304   : > { %1611 = vmatprep.subr.bf16.mxu0 %v1941_v4 }
 0x305   : > { %v709_v62 = vpop.trf.xlu1 }
 0x306   : > { %1579 = vmatprep.mubr.msk.bf16.mxu0 %vm713_vm1, %v709_v62  ;;  %1597 = vmatprep.mubr.msk.bf16.mxu1 %vm713_vm1, %v709_v62  ;;  %v1766_v21 = vpop.eup %1765 }
 0x307   : > { %1612 = vmatpush3.bf16.msra.mxu0 %v1467_v59 }
 0x308   : > { %1613 = vmatprep.subr.bf16.mxu0 %v1941_v4 }
 0x309   : > { %v710_v2 = vpop.trf.xlu1 }
 0x30a   : > { %1580 = vmatmul.mubr.msk.bf16.gmra.mrb[12].mxu0 %vm713_vm1, %v710_v2  ;;  %1598 = vmatmul.mubr.msk.bf16.gmra.mrb[12].mxu1 %vm713_vm1, %v710_v2 }
 0x30b   : > { %1614 = vmatpush3.bf16.msra.mxu0 %v1468_v63 }
 0x30c   : > { %1615 = vmatprep.subr.bf16.mxu0 %v1941_v4 }
 0x30d   : > { %v711_v7 = vpop.trf.xlu1 }
 0x30e   : > { %1583 = vmatprep.mubr.msk.bf16.mxu0 %vm713_vm1, %v711_v7  ;;  %1601 = vmatprep.mubr.msk.bf16.mxu1 %vm713_vm1, %v711_v7 }
 0x30f   : > { %1616 = vmatpush3.bf16.msra.mxu0 %v1469_v3 }
 0x310   : > { %1617 = vmatprep.subr.bf16.mxu0 %v1941_v4 }
 0x311   : > { %v712_v11 = vpop.trf.xlu1 }
 0x312   : > { %1584 = vmatmul.mubr.msk.bf16.gmra.mrb[16].mxu0 %vm713_vm1, %v712_v11  ;;  %1602 = vmatmul.mubr.msk.bf16.gmra.mrb[16].mxu1 %vm713_vm1, %v712_v11 }
 0x313   : > { %1618 = vmatpush3.bf16.msra.mxu0 %v1470_v8  ;;  %1621 = vmatprep.mubr.msk.bf16.mxu0 %vm1943_vm0, %v1941_v4 }
 0x314   : > { %1619 = vmatprep.subr.bf16.mxu0 %v1941_v4  ;;  %1641 = vmatprep.mubr.msk.bf16.mxu1 %vm1943_vm0, %v1941_v4  ;;  %vm973_vm0 = vcmp.gt.bf16.partialorder %v2204_v61, 0  ;;  %v1099_v61 = vunpack.c.l.b16 %v1083_v56 }
 0x317   : > { %1620 = vmatpush3.bf16.msra.mxu0 %v1471_v13 }
 0x345   : > { %v1143_v17 = vpop.xlane.xlu1 %1142 }
 0x346   : > { %v1145_v18 = vsub.f32 %v2162_v19, %v1143_v17 }
 0x348   : > { %v1148_v20 = vmul.f32 1.442695, %v1145_v18 }
 0x34a   : > { %1767 = vpow2.f32 %v1148_v20 }
 0x354   : > { %v1768_v22 = vpop.eup %1767 }
 0x355   : > { %v2244_v23 = vpack.c.bf16 %v1768_v22, %v1766_v21 }
 0x357   : > { %1622 = vmatmul.mubr.bf16.vlgmr.msra.gmra.mrb[20].mxu0 %v2244_v23 }
 0x3cd   : > { %v2247_v24 = vpop.f32.mrb[4].mxu0  ;;  %v1591_v25 = vpop.f32.mrb[4].mxu1 }
 0x3ce   : > { %v2249_v26 = vpop.f32.mrb[5].mxu0  ;;  %v869_v27 = vpop.f32.mrb[5].mxu1  ;;  %v934_v32 = vmax.f32 %v1591_v25, 1e-20 }
 0x3cf   : > { %v932_v12 = vmax.f32 %v869_v27, 1e-20  ;;  %v2251_v28 = vpop.f32.mrb[6].mxu0  ;;  %v1592_v29 = vpop.f32.mrb[6].mxu1 }
 0x3d0   : > { %v2253_v19 = vpop.f32.mrb[7].mxu0  ;;  %v872_v31 = vpop.f32.mrb[7].mxu1  ;;  %v935_v34 = vmax.f32 %v1592_v29, 1e-20 }
 0x3d1   : > { %1769 = vrcp.f32 %v932_v12  ;;  %v933_v33 = vmax.f32 %v872_v31, 1e-20 }
 0x3d3   : > { %1771 = vrcp.f32 %v933_v33 }
 0x3d4   : > { %1773 = vrcp.f32 %v934_v32 }
 0x3d5   : > { %v2255_v35 = vpop.f32.mrb[8].mxu0  ;;  %v1595_v36 = vpop.f32.mrb[8].mxu1  ;;  %1775 = vrcp.f32 %v935_v34 }
 0x3d6   : > { %v2257_v37 = vpop.f32.mrb[9].mxu0  ;;  %v885_v38 = vpop.f32.mrb[9].mxu1  ;;  %v938_v42 = vmax.f32 %v1595_v36, 1e-20 }
 0x3d7   : > { %v936_v39 = vmax.f32 %v885_v38, 1e-20  ;;  %v2259_v40 = vpop.f32.mrb[10].mxu0  ;;  %v1596_v41 = vpop.f32.mrb[10].mxu1 }
 0x3d8   : > { %v2261_v43 = vpop.f32.mrb[11].mxu0  ;;  %v888_v46 = vpop.f32.mrb[11].mxu1  ;;  %v939_v51 = vmax.f32 %v1596_v41, 1e-20 }
 0x3d9   : > { %1777 = vrcp.f32 %v936_v39  ;;  %v937_v47 = vmax.f32 %v888_v46, 1e-20 }
 0x3da   : > { %1779 = vrcp.f32 %v938_v42 }
 0x3db   : > { %v1770_v50 = vpop.eup %1769  ;;  %1781 = vrcp.f32 %v937_v47 }
 0x3dc   : > { %982 = vperm.xlu0 %1715, %v1770_v50   ;;  %1783 = vrcp.f32 %v939_v51 }
 0x3dd   : > { %v1772_v54 = vpop.eup %1771  ;;  %v2263_v55 = vpop.f32.mrb[12].mxu0 }
 0x3de   : > { %v1599_v58 = vpop.f32.mrb[12].mxu1  ;;  %987 = vperm.xlu1 %1716, %v1772_v54   ;;  %v2265_v59 = vpop.f32.mrb[13].mxu0 }
 0x3df   : > { %v901_v62 = vpop.f32.mrb[13].mxu1  ;;  %v1774_v63 = vpop.eup %1773  ;;  %v942_v8 = vmax.f32 %v1599_v58, 1e-20 }
 0x3e0   : > { %v940_v2 = vmax.f32 %v901_v62, 1e-20  ;;  %v2267_v3 = vpop.f32.mrb[14].mxu0  ;;  %v1600_v7 = vpop.f32.mrb[14].mxu1  ;;  %992 = vperm.xlu0 %1715, %v1774_v63  }
 0x3e1   : > { %v2269_v11 = vpop.f32.mrb[15].mxu0  ;;  %v904_v13 = vpop.f32.mrb[15].mxu1  ;;  %v943_v17 = vmax.f32 %v1600_v7, 1e-20 }
 0x3e2   : > { %1785 = vrcp.f32 %v940_v2  ;;  %v941_v14 = vmax.f32 %v904_v13, 1e-20  ;;  %v1776_v15 = vpop.eup %1775  ;;  %v1077_v13 = vsel %vm965_vm3, 65537, %v1942_v30 }
 0x3e3   : > { %v1778_v16 = vpop.eup %1777  ;;  %1787 = vrcp.f32 %v942_v8  ;;  %v1076_v8 = vsel %vm964_vm2, 65537, %v1942_v30 }
 0x3e4   : > { %997 = vperm.xlu0 %1715, %v1776_v15   ;;  %1002 = vperm.xlu1 %1716, %v1778_v16   ;;  %1789 = vrcp.f32 %v941_v14  ;;  %v1780_v21 = vpop.eup %1779  ;;  %v1092_v14 = vunpack.c.l.b16 %v1076_v8  ;;  %v1093_v15 = vunpack.c.l.b16 %v1077_v13  ;;  %v1078_v16 = vsel %vm966_vm4, 65537, %v1942_v30 }
 0x3e5   : > { %v2271_v18 = vpop.f32.mrb[16].mxu0  ;;  %v1603_v20 = vpop.f32.mrb[16].mxu1  ;;  %1791 = vrcp.f32 %v943_v17  ;;  %v1079_v17 = vsel %vm967_vm5, 65537, %v1942_v30  ;;  %v1094_v49 = vunpack.c.l.b16 %v1078_v16  ;;  %vm974_vm4 = vcmp.gt.bf16.partialorder %v2211_v0, 0 }
 0x3e6   : > { %v2273_v22 = vpop.f32.mrb[17].mxu0  ;;  %v917_v25 = vpop.f32.mrb[17].mxu1  ;;  %v946_v32 = vmax.f32 %v1603_v20, 1e-20  ;;  %vm2293_vm8 = vcmp.ne.s32.totalorder %v1092_v14, 0  ;;  %vm2297_vm9 = vcmp.ne.s32.totalorder %v1093_v15, 0 }
 0x3e7   : > { %v1782_v27 = vpop.eup %1781  ;;  %v944_v12 = vmax.f32 %v917_v25, 1e-20  ;;  %v2275_v29 = vpop.f32.mrb[18].mxu0  ;;  %vm1472_vm10 = vmpackc.low %vm2297_vm9, %vm2293_vm8  ;;  %vm2311_vm13 = vcmp.ne.s32.totalorder %v1094_v49, 0  ;;  %vm975_vm5 = vcmp.gt.bf16.partialorder %v2213_v1, 0  ;;  %vm2353_vm8 = vcmp.ne.s32.totalorder %v1099_v61, 0 }
 0x3e8   : > { %v1604_v31 = vpop.f32.mrb[18].mxu1  ;;  %1012 = vperm.xlu1 %1716, %v1780_v21   ;;  %1007 = vperm.xlu0 %1715, %v1782_v27   ;;  %v2277_v33 = vpop.f32.mrb[19].mxu0  ;;  %v1095_v21 = vunpack.c.l.b16 %v1079_v17  ;;  %v1087_v14 = vsel %vm975_vm5, 65537, %v1942_v30  ;;  %vm976_vm9 = vcmp.gt.bf16.partialorder %v2220_v5, 0  ;;  %v1805_v61 = vld [vmem:[%s2118_s21] sm:$0xff] }
 0x3e9   : > { %v920_v34 = vpop.f32.mrb[19].mxu1  ;;  %1793 = vrcp.f32 %v944_v12  ;;  %v1784_v38 = vpop.eup %1783  ;;  %v947_v41 = vmax.f32 %v1604_v31, 1e-20  ;;  %v1080_v12 = vsel %vm968_vm6, 65537, %v1942_v30 }
 0x3ea   : > { %v945_v36 = vmax.f32 %v920_v34, 1e-20  ;;  %1795 = vrcp.f32 %v946_v32  ;;  %v1096_v32 = vunpack.c.l.b16 %v1080_v12  ;;  %v1097_v34 = vunpack.c.l.b16 %v1081_v52 }
 0x3eb   : > { %vm2315_vm14 = vcmp.ne.s32.totalorder %v1095_v21, 0 }
 0x3ec   : > { %v1786_v39 = vpop.eup %1785  ;;  %1017 = vperm.xlu0 %1715, %v1784_v38   ;;  %1797 = vrcp.f32 %v945_v36  ;;  %v1082_v36 = vsel %vm970_vm11, 65537, %v1942_v30  ;;  %vm1475_vm1 = vmpackc.low %vm2315_vm14, %vm2311_vm13  ;;  %vm2330_vm2 = vcmp.ne.s32.totalorder %v1096_v32, 0  ;;  %vm2334_vm3 = vcmp.ne.s32.totalorder %v1097_v34, 0 }
 0x3ed   : > { %1022 = vperm.xlu1 %1716, %v1786_v39   ;;  %v1788_v42 = vpop.eup %1787  ;;  %1799 = vrcp.f32 %v947_v41  ;;  %v1098_v60 = vunpack.c.l.b16 %v1082_v36  ;;  %vm1478_vm6 = vmpackc.low %vm2334_vm3, %vm2330_vm2  ;;  %vm978_vm14 = vcmp.gt.bf16.partialorder %v2229_v9, 0 }
 0x3ee   : > { %v1790_v46 = vpop.eup %1789  ;;  %v1090_v52 = vsel %vm978_vm14, 65537, %v1942_v30 }
 0x3ef   : > { %v1792_v47 = vpop.eup %1791  ;;  %vm2349_vm7 = vcmp.ne.s32.totalorder %v1098_v60, 0 }
 0x3f0   : > { %1027 = vperm.xlu0 %1715, %v1790_v46   ;;  %vm1481_vm11 = vmpackc.low %vm2353_vm8, %vm2349_vm7 }
 0x3f1   : > { %1032 = vperm.xlu1 %1716, %v1788_v42  }
 0x3f3   : > { %v1794_v50 = vpop.eup %1793 }
 0x3f4   : > { %1037 = vperm.xlu0 %1715, %v1792_v47   ;;  %v1796_v51 = vpop.eup %1795 }
 0x3f5   : > { %1042 = vperm.xlu1 %1716, %v1794_v50  }
 0x3f6   : > { %v1798_v54 = vpop.eup %1797 }
 0x3f7   : > { %v1800_v58 = vpop.eup %1799 }
 0x3f8   : > { %1047 = vperm.xlu0 %1715, %v1798_v54  }
 0x3f9   : > { %1052 = vperm.xlu1 %1716, %v1796_v51  }
 0x3fc   : > { %1057 = vperm.xlu0 %1715, %v1800_v58  }
 0x42a   : > { %v2279_v62 = vpop.f32.mrb[20].mxu0 }
 0x42b   : > { %v1623_v63 = vpop.f32.mrb[21].mxu0  ;;  %v1289_v42 = vmax.f32 %v2279_v62, 1e-20 }
 0x42c   : > { %v2281_v2 = vpop.f32.mrb[22].mxu0 }
 0x42d   : > { %v1624_v7 = vpop.f32.mrb[23].mxu0  ;;  %v1290_v46 = vmax.f32 %v2281_v2, 1e-20  ;;  %1801 = vrcp.f32 %v1289_v42  ;;  %v1806_v2 = vld [vmem:[%s2118_s21 + $0x8] sm:$0xff] }
 0x42f   : > { %1803 = vrcp.f32 %v1290_v46 }
 0x45b   : > { %v983_v20 = vpop.permute.xlu0 %982 }
 0x45c   : > { %v1060_v25 = vmul.f32 %v983_v20, %v2249_v26  ;;  %v1103_v20 = vunpack.c.l.b16 %v1087_v14 }
 0x45d   : > { %v988_v48 = vpop.permute.xlu1 %987 }
 0x45e   : > { %v1061_v27 = vmul.f32 %v988_v48, %v2253_v19  ;;  %vm2391_vm2 = vcmp.ne.s32.totalorder %v1103_v20, 0 }
 0x45f   : > { %v993_v53 = vpop.permute.xlu0 %992 }
 0x460   : > { %v1473_v31 = vpack.c.bf16 %v1061_v27, %v1060_v25  ;;  %v1062_v57 = vmul.f32 %v2247_v24, %v993_v53  ;;  %v1084_v24 = vsel %vm972_vm15, 65537, %v1942_v30  ;;  %vm979_vm15 = vcmp.gt.bf16.partialorder %v2231_v10, 0 }
 0x461   : > { %v1100_v63 = vunpack.c.l.b16 %v1084_v24  ;;  %v1091_v53 = vsel %vm979_vm15, 65537, %v1942_v30 }
 0x462   : > { %1626 = vmatpush3.bf16.msk.msra.mxu1 %vm1472_vm10, %v1473_v31  ;;  %vm977_vm10 = vcmp.gt.bf16.partialorder %v2222_v6, 0  ;;  %v1088_v6 = vsel %vm976_vm9, 65537, %v1942_v30 }
 0x463   : > { %v1003_v38 = vpop.permute.xlu1 %1002  ;;  %v998_v39 = vpop.permute.xlu0 %997  ;;  %1627 = vmatprep.subr.bf16.mxu1 %v1941_v4  ;;  %vm2368_vm12 = vcmp.ne.s32.totalorder %v1100_v63, 0  ;;  %v1089_v48 = vsel %vm977_vm10, 65537, %v1942_v30  ;;  %v1104_v25 = vunpack.c.l.b16 %v1088_v6 }
 0x464   : > { %v1063_v41 = vmul.f32 %v2251_v28, %v998_v39  ;;  %v1085_v28 = vsel %vm973_vm0, 65537, %v1942_v30  ;;  %v1064_v54 = vmul.f32 %v1003_v38, %v2257_v37  ;;  %v1105_v9 = vunpack.c.l.b16 %v1089_v48 }
 0x465   : > { %v1101_v7 = vunpack.c.l.b16 %v1085_v28 }
 0x466   : > { %v1476_v47 = vpack.c.bf16 %v1063_v41, %v1062_v57  ;;  %vm2408_vm5 = vcmp.ne.s32.totalorder %v1105_v9, 0 }
 0x467   : > { %v1013_v50 = vpop.permute.xlu1 %1012  ;;  %v1008_v51 = vpop.permute.xlu0 %1007  ;;  %vm2372_vm13 = vcmp.ne.s32.totalorder %v1101_v7, 0 }
 0x468   : > { %v1065_v58 = vmul.f32 %v1008_v51, %v2261_v43  ;;  %1628 = vmatpush3.bf16.msk.msra.mxu1 %vm1475_vm1, %v1476_v47  ;;  %v1086_v43 = vsel %vm974_vm4, 65537, %v1942_v30  ;;  %v1066_v15 = vmul.f32 %v2255_v35, %v1013_v50  ;;  %vm1484_vm0 = vmpackc.low %vm2372_vm13, %vm2368_vm12  ;;  %vm2404_vm4 = vcmp.ne.s32.totalorder %v1104_v25, 0 }
 0x469   : > { %1629 = vmatprep.subr.bf16.mxu1 %v1941_v4  ;;  %v1106_v30 = vunpack.c.l.b16 %v1090_v52 }
 0x46a   : > { %v1479_v8 = vpack.c.bf16 %v1065_v58, %v1064_v54 }
 0x46b   : > { %v1018_v1 = vpop.permute.xlu0 %1017  ;;  %vm1122_vm7 = vcmp.ne.s32.totalorder %v1106_v30, 0 }
 0x46c   : > { %v1023_v0 = vpop.permute.xlu1 %1022  ;;  %v1067_v16 = vmul.f32 %v2259_v40, %v1018_v1  ;;  %1630 = vmatpush3.bf16.msk.msra.mxu1 %vm1478_vm6, %v1479_v8  ;;  %v1102_v40 = vunpack.c.l.b16 %v1086_v43  ;;  %vm1490_vm6 = vmpackc.low %vm2408_vm5, %vm2404_vm4 }
 0x46d   : > { %1631 = vmatprep.subr.bf16.mxu1 %v1941_v4  ;;  %v1068_v49 = vmul.f32 %v1023_v0, %v2265_v59 }
 0x46e   : > { %v1482_v35 = vpack.c.bf16 %v1067_v16, %v1066_v15  ;;  %vm2387_vm1 = vcmp.ne.s32.totalorder %v1102_v40, 0 }
 0x46f   : > { %v1028_v45 = vpop.permute.xlu0 %1027  ;;  %vm1487_vm3 = vmpackc.low %vm2391_vm2, %vm2387_vm1 }
 0x470   : > { %v1033_v44 = vpop.permute.xlu1 %1032  ;;  %v1069_v21 = vmul.f32 %v1028_v45, %v2269_v11  ;;  %1632 = vmatpush3.bf16.msk.msra.mxu1 %vm1481_vm11, %v1482_v35 }
 0x471   : > { %1633 = vmatprep.subr.bf16.mxu1 %v1941_v4  ;;  %v1070_v31 = vmul.f32 %v2263_v55, %v1033_v44  ;;  %v1107_v55 = vunpack.c.l.b16 %v1091_v53 }
 0x472   : > { %v1485_v27 = vpack.c.bf16 %v1069_v21, %v1068_v49 }
 0x473   : > { %v1038_v10 = vpop.permute.xlu0 %1037  ;;  %vm1123_vm8 = vcmp.ne.s32.totalorder %v1107_v55, 0 }
 0x474   : > { %v1043_v11 = vpop.permute.xlu1 %1042  ;;  %v1071_v32 = vmul.f32 %v2267_v3, %v1038_v10  ;;  %1634 = vmatpush3.bf16.msk.msra.mxu1 %vm1484_vm0, %v1485_v27  ;;  %vm1493_vm9 = vmpackc.low %vm1123_vm8, %vm1122_vm7 }
 0x475   : > { %1635 = vmatprep.subr.bf16.mxu1 %v1941_v4  ;;  %v1072_v36 = vmul.f32 %v1043_v11, %v2273_v22 }
 0x476   : > { %v1488_v26 = vpack.c.bf16 %v1071_v32, %v1070_v31 }
 0x477   : > { %v1048_v3 = vpop.permute.xlu0 %1047 }
 0x478   : > { %v1073_v38 = vmul.f32 %v1048_v3, %v2277_v33  ;;  %1636 = vmatpush3.bf16.msk.msra.mxu1 %vm1487_vm3, %v1488_v26  ;;  %v1053_v39 = vpop.permute.xlu1 %1052 }
 0x479   : > { %1637 = vmatprep.subr.bf16.mxu1 %v1941_v4  ;;  %v1074_v41 = vmul.f32 %v2271_v18, %v1053_v39  ;;  %v1802_v18 = vpop.eup %1801 }
 0x47a   : > { %v1491_v56 = vpack.c.bf16 %v1073_v38, %v1072_v36  ;;  %v1804_v47 = vpop.eup %1803 }
 0x47b   : > { %v1058_v57 = vpop.permute.xlu0 %1057 }
 0x47c   : > { %v1075_v22 = vmul.f32 %v2275_v29, %v1058_v57  ;;  %1638 = vmatpush3.bf16.msk.msra.mxu1 %vm1490_vm6, %v1491_v56 }
 0x47d   : > { %1639 = vmatprep.subr.bf16.mxu1 %v1941_v4 }
 0x47e   : > { %v1494_v33 = vpack.c.bf16 %v1075_v22, %v1074_v41 }
 0x480   : > { %1640 = vmatpush3.bf16.msk.msra.mxu1 %vm1493_vm9, %v1494_v33 }
 0x483   : > { %1642 = vmatmul.mubr.bf16.vlgmr.msra.gmra.mrb[20].mxu1 %v2244_v23 }
 0x556   : > { %v1282_v29 = vpop.f32.mrb[20].mxu1 }
 0x557   : > { %v1293_v60 = vmul.f32 %v1802_v18, %v1282_v29  ;;  %v1643_v4 = vpop.f32.mrb[21].mxu1 }
 0x558   : > { %v1285_v23 = vpop.f32.mrb[22].mxu1 }
 0x559   : > { %v1295_v24 = vadd.f32 %v1805_v61, %v1293_v60  ;;  %v1294_v62 = vmul.f32 %v1804_v47, %v1285_v23  ;;  %v1644_v28 = vpop.f32.mrb[23].mxu1 }
 0x55b   : > { %1297 = vst [vmem:[%s316_s13] sm:$0xff] %v1295_v24  ;;  %v1296_v50 = vadd.f32 %v1806_v2, %v1294_v62 }
 0x55d   : > { %1298 = vst [vmem:[%s316_s13 + $0x8] sm:$0xff] %v1296_v50 }
 0x55e   : > { %1876 = shalt.err (!%p1873_p11)
}
 0x55f   : > { %s1877_s21 = scalar_lea.hbm %s2433_s29, 256  ;;  %s1881_s19 = scalar_lea.hbm %s2484_s7, 512 }
 0x560   : > { %p1878_p13 = scmp.ne.s32.totalorder %s2433_s29, %s1877_s21  ;;  %p1882_p6 = scmp.lt.u32.totalorder %s2433_s29, %s2484_s7 }
 0x561   : > { %p1883_p9 = scmp.lt.u32.totalorder %s1881_s19, %s1877_s21  ;;  %p1885_p12 = scmp.lt.u32.totalorder %s1877_s21, %s2433_s29 }
 0x562   : > { %p1879_p0 = pnand %p1878_p13, %p2526_p1 }
 0x563   : > { %p1884_p10 = por %p1883_p9, %p1882_p6 }
 0x564   : > { %p1880_p5 = pneg %p1879_p0 }
 0x565   : > { %p1886_p2 = por %p1885_p12, %p1884_p10 }
 0x567   : > { %p1887_p3 = pnand %p1886_p2, %p1880_p5 }
 0x569   : > { %1890 = shalt.err (!%p1887_p3)
}
 0x56a   : > { %s1946_s20 = smov 128   ;;  %s1947_s22 = smov 8  }
 0x56b   : > { %1653 = dma.vmem_to_hbm [thread:$0]  (%p2526_p1), %s2428_s18, 256, %s2433_s29, %s2436_s28, %s1946_s20, %s1946_s20, %s1947_s22  }
 0x56c PF: > { %p1670_p4 = scmp.ge.s32.totalorder %s1933_s27, 2  ;;  %s1328_s23 = sand.u32 1, %s1921_s24  }
 0x56d   : > { %p2527_p7 = scmp.ne.s32.totalorder %s2490_s12, 0  ;;  %s1329_s8 = scalar_lea.sflag [#allocation4], %s1328_s23 }
 0x56f   : > { %p1663_p8 = pnand %p1670_p4, %p2527_p7 }
 0x571   : > { %1916 = dma.done.wait (!%p1663_p8), %s1329_s8, 256  }
 0x572   : > { %1918 = vsyncadd (!%p1663_p8), %s1329_s8, 4294967040  ;;  %s2528_s9 = sld [smem:[#allocation11_spill]]  ;;  %p19_p11 = scmp.ge.s32.totalorder %s2013_s30, 4  }
 0x573   : > { %s2529_s24 = smov %s1925_s25  ;;  %s2530_s25 = smov %s1929_s26 }
 0x574   : > { %s2532_s27 = smov %s2013_s30  ;;  %21 = sbr.rel (!%p19_p11) target bundleno = 5 (0x5), region = 95 }
 0x578   : > { %s2531_s26 = smov %s2528_s9 }
 0x57b   :  { %1334 = vsyncpa [#allocation3], 1 }
 0x57c   :  { %1336 = vsyncpa [#allocation3 + $0x1], 1 }
 0x57d   :  { %1337 = vsyncpa [#allocation6], 1 }
 0x57e   :  { %1338 = vsyncpa [#allocation4], 1 }
 0x57f   :  { %1340 = vsyncpa [#allocation4 + $0x1], 1 }

</bundles_post_ra>
